<compile_context>
chip_gen: v6e
topology: v6e:2x2x1
jax: 0.10.0
libtpu: 0.0.40
codegen_flags: <defaults>
</compile_context>

<pallas_src>
import jax
import jax.numpy as jnp
from jax.experimental import pallas as pl
from jax.experimental.pallas import tpu as pltpu


# ----------------------------------------------------------------------------
# Helpers
# ----------------------------------------------------------------------------
def _round_up(v, m):
    return ((v + m - 1) // m) * m


def _tpu_vmem_capacity_bytes(default=64 << 20):
    try:
        cap = int(pltpu.get_tpu_info().vmem_capacity_bytes)
        if cap > 0:
            return cap
    except Exception:
        pass
    return default


def _vmem_limit_bytes(cap_bytes):
    # leave ~12 MiB headroom, never below the 32 MiB scoped default,
    # never above 100 MiB (v5e/v6e have 128 MiB, v7x 64 MiB).
    return max(32 << 20, min(cap_bytes - (12 << 20), 100 << 20))


def _pick_batch_block(n, h, w, vmem_cap_bytes):
    """Batch images per grid step: divisor of n, keeps >=2 grid steps when
    possible (v7x has 2 TCs), prefers B*H*W % 8 == 0 (sublane alignment)."""
    cap = 16 if vmem_cap_bytes >= (96 << 20) else 8
    max_b = min(n, cap)
    if n >= 2:
        max_b = min(max_b, max(1, n // 2))
    divs = [b for b in range(1, max_b + 1) if n % b == 0]
    aligned = [b for b in divs if (b * h * w) % 8 == 0]
    return max(aligned) if aligned else max(divs)


# ----------------------------------------------------------------------------
# Fused kernel
# ----------------------------------------------------------------------------
def _make_fused_kernel(num_conv, B, H, W, cin0, cdim, c_total,
                       im2col_flags, alias_b):
    """Build the fused head kernel for a fixed configuration."""

    def kernel(*refs):
        # ---- unpack refs: inputs, output, scratch --------------------------
        pos = 0
        x_ref = refs[pos]; pos += 1
        conv_refs = []
        for _ in range(num_conv):
            conv_refs.append((refs[pos], refs[pos + 1]))
            pos += 2
        wdec_ref = refs[pos]; bdec_ref = refs[pos + 1]; pos += 2
        wpred_ref = refs[pos]; bpred_ref = refs[pos + 1]; pos += 2
        o_ref = refs[pos]; pos += 1
        scratch = refs[pos:]

        # Zero ONLY the halo strips of a padded buffer (interior is fully
        # overwritten each step).  At most once per buffer per grid step.
        zeroed = set()

        def ensure_halo(buf):
            if id(buf) in zeroed:
                return
            zeroed.add(id(buf))
            c = buf.shape[-1]
            zr = jnp.zeros((B, 1, W + 2, c), jnp.float32)
            zc = jnp.zeros((B, H + 2, 1, c), jnp.float32)
            buf[:, 0:1, :, :] = zr
            buf[:, H + 1:H + 2, :, :] = zr
            buf[:, :, 0:1, :] = zc
            buf[:, :, W + 1:W + 2, :] = zc

        # ---- conv stack (3x3, pad=1, ReLU); activations stay in VMEM -------
        if num_conv == 0:
            feat = x_ref[...].reshape(B * H * W, cin0).astype(jnp.float32)
        else:
            pad0 = scratch[0]
            ensure_halo(pad0)
            pad0[:, 1:H + 1, 1:W + 1, :] = x_ref[...].astype(jnp.float32)

            pings = []
            if num_conv >= 2:
                pings.append(scratch[1])
            if num_conv >= 3:
                pings.append(pad0 if alias_b else scratch[2])

            src = pad0
            feat = None
            for k in range(num_conv):
                w_ref, b_ref = conv_refs[k]
                cin = cin0 if k == 0 else cdim
                if im2col_flags[k]:
                    # Small-K first layer: one (B*H*W, 9*cin) x (9*cin, cdim).
                    cols = [src[:, dy:dy + H, dx:dx + W, :]
                            for dy in range(3) for dx in range(3)]
                    patches = jnp.concatenate(cols, axis=-1)
                    patches = patches.reshape(B * H * W, 9 * cin)
                    acc = jnp.dot(patches, w_ref[...],
                                  preferred_element_type=jnp.float32)
                else:
                    # 9 accumulating tap matmuls: no patch buffer, no concat.
                    acc = None
                    for dy in range(3):
                        for dx in range(3):
                            tap = src[:, dy:dy + H, dx:dx + W, :]
                            tap = tap.reshape(B * H * W, cin)
                            d = jnp.dot(tap, w_ref[dy * 3 + dx],
                                        preferred_element_type=jnp.float32)
                            acc = d if acc is None else acc + d
                y = jnp.maximum(acc + b_ref[...], 0.0)
                if k < num_conv - 1:
                    dst = pings[k % 2]
                    ensure_halo(dst)
                    dst[:, 1:H + 1, 1:W + 1, :] = y.reshape(B, H, W, cdim)
                    src = dst
                else:
                    feat = y                      # (B*H*W, cdim), f32

        # ---- fused deconv(2x2, s2) + ReLU + 1x1 predictor -------------------
        # One matmul over all 4 taps (N = 4*cdim), then one matmul against a
        # block-diagonal predictor weight: output is a single lane-dense
        # 128-aligned block per pixel with the 4 taps' pred channels packed.
        yd = jnp.dot(feat, wdec_ref[...], preferred_element_type=jnp.float32)
        yd = jnp.maximum(yd + bdec_ref[...], 0.0)
        p = jnp.dot(yd, wpred_ref[...],
                    preferred_element_type=jnp.float32) + bpred_ref[...]
        o_ref[...] = p.reshape(B, H, W, c_total).astype(o_ref.dtype)

    return kernel


def fused_head(x_nhwc, params):
    """Run the fused head. Returns (out, c_total, pred_out) where
    out[n, i, j, (dy*2+dx)*pred_out + c] == predictor[n, c, 2i+dy, 2j+dx]."""
    N, H, W, cin0 = x_nhwc.shape
    convs = params["convs"]
    num_conv = len(convs)
    dw = params["deconv_w"]                       # (2, 2, cin_d, cdim)
    cin_d, cdim = dw.shape[2], dw.shape[3]
    pw = params["pred_w"]                         # (cdim, pred_out)
    pred_out = pw.shape[-1]
    c_total = _round_up(4 * pred_out, 128)        # packed, lane-dense output

    vmem_cap = _tpu_vmem_capacity_bytes()
    B = _pick_batch_block(N, H, W, vmem_cap)
    grid = (N // B,)

    # Which conv layers use im2col (first layer only, small cin).
    im2col_flags = tuple(
        (k == 0 and 9 * convs[k][0].shape[2] <= 256) for k in range(num_conv))

    # Host-side weight repacks (matmul / lane friendly layouts).
    conv_inputs, conv_specs = [], []
    for k, (w, b) in enumerate(convs):
        cin = w.shape[2]
        if im2col_flags[k]:
            conv_inputs += [w.reshape(9 * cin, cdim), b]
            conv_specs += [pl.BlockSpec((9 * cin, cdim), lambda n: (0, 0)),
                           pl.BlockSpec((1, cdim), lambda n: (0, 0))]
        else:
            conv_inputs += [w.reshape(9, cin, cdim), b]
            conv_specs += [pl.BlockSpec((9, cin, cdim), lambda n: (0, 0, 0)),
                           pl.BlockSpec((1, cdim), lambda n: (0, 0))]

    # deconv: (dy,dx,ci,co) -> (ci, 4*cdim) with tap t = dy*2+dx.
    wdec_flat = jnp.transpose(dw, (2, 0, 1, 3)).reshape(cin_d, 4 * cdim)
    bdec_all = jnp.tile(params["deconv_b"], (1, 4))        # (1, 4*cdim)
    # predictor as a block-diagonal (4*cdim, c_total) matrix (taps packed).
    wpred_bd = jnp.zeros((4 * cdim, c_total), jnp.float32)
    bpred_bd = jnp.zeros((1, c_total), jnp.float32)
    for t in range(4):
        wpred_bd = wpred_bd.at[t * cdim:(t + 1) * cdim,
                               t * pred_out:(t + 1) * pred_out].set(pw)
        bpred_bd = bpred_bd.at[0, t * pred_out:(t + 1) * pred_out].set(
            params["pred_b"][0])

    # Padded-activation scratch (halo buffers); reuse pad0 as 2nd ping-pong
    # buffer on matching channel counts (saves VMEM on v7x).
    scratch_shapes = []
    alias_b = False
    if num_conv >= 1:
        scratch_shapes.append(pltpu.VMEM((B, H + 2, W + 2, cin0), jnp.float32))
    if num_conv >= 2:
        scratch_shapes.append(pltpu.VMEM((B, H + 2, W + 2, cdim), jnp.float32))
    if num_conv >= 3:
        if cin0 == cdim:
            alias_b = True
        else:
            scratch_shapes.append(
                pltpu.VMEM((B, H + 2, W + 2, cdim), jnp.float32))

    kernel = _make_fused_kernel(num_conv, B, H, W, cin0, cdim, c_total,
                                im2col_flags, alias_b)

    out = pl.pallas_call(
        kernel,
        out_shape=jax.ShapeDtypeStruct((N, H, W, c_total), x_nhwc.dtype),
        grid=grid,
        in_specs=(
            [pl.BlockSpec((B, H, W, cin0), lambda n: (n, 0, 0, 0))]
            + conv_specs
            + [pl.BlockSpec((cin_d, 4 * cdim), lambda n: (0, 0)),
               pl.BlockSpec((1, 4 * cdim), lambda n: (0, 0)),
               pl.BlockSpec((4 * cdim, c_total), lambda n: (0, 0)),
               pl.BlockSpec((1, c_total), lambda n: (0, 0))]
        ),
        out_specs=pl.BlockSpec((B, H, W, c_total), lambda n: (n, 0, 0, 0)),
        scratch_shapes=scratch_shapes,
        compiler_params=pltpu.CompilerParams(
            dimension_semantics=("parallel",),
            vmem_limit_bytes=_vmem_limit_bytes(vmem_cap)),
    )(x_nhwc, *conv_inputs, wdec_flat, bdec_all, wpred_bd, bpred_bd)
    return out, c_total, pred_out


# ----------------------------------------------------------------------------
# Module: parameter init + forward
# ----------------------------------------------------------------------------
def init_voxel_head_params(key, *, num_classes, input_channels, num_conv,
                           conv_dims, num_depth, reg_class_agnostic):
    eff_classes = 1 if reg_class_agnostic else num_classes
    params = {"convs": []}
    for k in range(num_conv):
        cin = input_channels if k == 0 else conv_dims
        key, kw, kb = jax.random.split(key, 3)
        # deterministic stand-in for c2_msra_fill (kaiming normal, fan_out);
        # nonzero biases used here purely to exercise the bias paths.
        std = (2.0 / (3 * 3 * conv_dims)) ** 0.5
        w = std * jax.random.normal(kw, (3, 3, cin, conv_dims), jnp.float32)
        b = 0.1 * jax.random.normal(kb, (1, conv_dims), jnp.float32)
        params["convs"].append((w, b))
    key, kw, kb = jax.random.split(key, 3)
    cin = conv_dims if num_conv > 0 else input_channels
    std = (2.0 / (2 * 2 * conv_dims)) ** 0.5
    # stored as (kh, kw, Cin, Cout); torch layout is (Cin, Cout, kh, kw)
    params["deconv_w"] = std * jax.random.normal(kw, (2, 2, cin, conv_dims),
                                                 jnp.float32)
    params["deconv_b"] = 0.1 * jax.random.normal(kb, (1, conv_dims), jnp.float32)
    key, kw, kb = jax.random.split(key, 3)
    pred_out = eff_classes * num_depth
    params["pred_w"] = 0.001 * jax.random.normal(kw, (conv_dims, pred_out),
                                                 jnp.float32)
    params["pred_b"] = 0.001 * jax.random.normal(kb, (1, pred_out), jnp.float32)
    return params, eff_classes


def voxel_head_forward(x_nchw, params, *, num_classes, num_depth):
    x = jnp.transpose(x_nchw, (0, 2, 3, 1))       # NCHW -> NHWC (once)
    out, c_total, pred_out = fused_head(x, params)
    N, H, W, _ = out.shape
    # Slice the lane padding off BEFORE the interleave transpose, then do the
    # stride-2 tap interleave + channel-first plumbing in one small transpose.
    out4 = out[..., :4 * pred_out].reshape(N, H, W, 2, 2, pred_out)
    y = jnp.transpose(out4, (0, 5, 1, 3, 2, 4)).reshape(N, pred_out,
                                                        2 * H, 2 * W)
    return y.reshape(N, num_classes, num_depth, 2 * H, 2 * W)


# Pure-JAX reference (for correctness check only).
def voxel_head_reference(x_nchw, params, *, num_classes, num_depth):
    x = x_nchw
    for w, b in params["convs"]:
        y = jax.lax.conv_general_dilated(
            x, w, window_strides=(1, 1), padding="SAME",
            dimension_numbers=("NCHW", "HWIO", "NCHW"))
        x = jax.nn.relu(y + b[0].reshape(1, -1, 1, 1))
    dw = params["deconv_w"]  # (2,2,Cin,Cout)
    y = jnp.einsum("ncij,hwcd->ndihjw", x, dw)
    N, Cout, H, _, W, _ = y.shape
    y = y.reshape(N, Cout, 2 * H, 2 * W) + params["deconv_b"][0].reshape(1, -1, 1, 1)
    x = jax.nn.relu(y)
    y = jnp.einsum("nchw,ck->nkhw", x, params["pred_w"])
    y = y + params["pred_b"][0].reshape(1, -1, 1, 1)
    N, C, H2, W2 = y.shape
    return y.reshape(N, num_classes, num_depth, H2, W2)


# TODO(synk): loss() (batch_crop_voxels_within_box + BCE) and init_mesh()
# (cubify) are not part of forward() and are not implemented here.

if __name__ == "__main__":
    # Small config consistent with the module (reg_class_agnostic=True -> 1 class).
    N, input_channels, H, W = 2, 4, 8, 8
    num_conv, conv_dims, num_depth = 2, 8, 4
    reg_class_agnostic, num_classes = True, 9

    key = jax.random.PRNGKey(0)
    key, kx = jax.random.split(key)
    x = jax.random.normal(kx, (N, input_channels, H, W), jnp.float32)  # NCHW

    params, eff_classes = init_voxel_head_params(
        key, num_classes=num_classes, input_channels=input_channels,
        num_conv=num_conv, conv_dims=conv_dims, num_depth=num_depth,
        reg_class_agnostic=reg_class_agnostic)

    out = voxel_head_forward(x, params, num_classes=eff_classes,
                             num_depth=num_depth)
    out = jax.block_until_ready(out)

    ref = voxel_head_reference(x, params, num_classes=eff_classes,
                               num_depth=num_depth)
    ref = jax.block_until_ready(ref)

    assert out.shape == (N, eff_classes, num_depth, 2 * H, 2 * W), out.shape
    assert jnp.allclose(out, ref, atol=1e-4, rtol=1e-4), \
        float(jnp.max(jnp.abs(out - ref)))
    print("KERNEL_OK")
</pallas_src>

<mosaic_0001>
module attributes {stable_mosaic.version = 11 : i64} {
  func.func @kernel(%arg0: i32, %arg1: memref<1x8x8x4xf32, #tpu.memory_space<vmem>>, %arg2: memref<36x8xf32, #tpu.memory_space<vmem>>, %arg3: memref<1x8xf32, #tpu.memory_space<vmem>>, %arg4: memref<9x8x8xf32, #tpu.memory_space<vmem>>, %arg5: memref<1x8xf32, #tpu.memory_space<vmem>>, %arg6: memref<8x32xf32, #tpu.memory_space<vmem>>, %arg7: memref<1x32xf32, #tpu.memory_space<vmem>>, %arg8: memref<32x128xf32, #tpu.memory_space<vmem>>, %arg9: memref<1x128xf32, #tpu.memory_space<vmem>>, %arg10: memref<1x8x8x128xf32, #tpu.memory_space<vmem>>, %arg11: memref<1x10x10x4xf32, #tpu.memory_space<vmem>>, %arg12: memref<1x10x10x8xf32, #tpu.memory_space<vmem>>) attributes {dimension_semantics = [#tpu.dimension_semantics<parallel>], iteration_bounds = array<i64: 2>, scalar_prefetch = 0 : i64, scratch_operands = 2 : i64, tpu.core_type = #tpu.core_type<tc>, window_params = [{transform_indices = @transform_0, window_bounds = array<i64: 1, 8, 8, 4>}, {pipeline_mode = #tpu.pipeline_mode<synchronous>, transform_indices = @transform_1, window_bounds = array<i64: 36, 8>}, {pipeline_mode = #tpu.pipeline_mode<synchronous>, transform_indices = @transform_2, window_bounds = array<i64: 1, 8>}, {pipeline_mode = #tpu.pipeline_mode<synchronous>, transform_indices = @transform_3, window_bounds = array<i64: 9, 8, 8>}, {pipeline_mode = #tpu.pipeline_mode<synchronous>, transform_indices = @transform_4, window_bounds = array<i64: 1, 8>}, {pipeline_mode = #tpu.pipeline_mode<synchronous>, transform_indices = @transform_5, window_bounds = array<i64: 8, 32>}, {pipeline_mode = #tpu.pipeline_mode<synchronous>, transform_indices = @transform_6, window_bounds = array<i64: 1, 32>}, {pipeline_mode = #tpu.pipeline_mode<synchronous>, transform_indices = @transform_7, window_bounds = array<i64: 32, 128>}, {pipeline_mode = #tpu.pipeline_mode<synchronous>, transform_indices = @transform_8, window_bounds = array<i64: 1, 128>}, {transform_indices = @transform_9, window_bounds = array<i64: 1, 8, 8, 128>}]} {
    %cst = arith.constant 0.000000e+00 : f32
    %0 = vector.broadcast %cst : f32 to vector<1x1x10x4xf32>
    %cst_0 = arith.constant 0.000000e+00 : f32
    %1 = vector.broadcast %cst_0 : f32 to vector<1x10x1x4xf32>
    %c0 = arith.constant 0 : index
    %c0_1 = arith.constant 0 : index
    %c0_2 = arith.constant 0 : index
    %c0_3 = arith.constant 0 : index
    %2 = vector.load %arg11[%c0, %c0_1, %c0_2, %c0_3] : memref<1x10x10x4xf32, #tpu.memory_space<vmem>>, vector<1x1x10x4xf32>
    tpu.vector_store %arg11[%c0, %c0_1, %c0_2, %c0_3], %0 {strides = array<i32>} : memref<1x10x10x4xf32, #tpu.memory_space<vmem>>, vector<1x1x10x4xf32>,
    %c0_4 = arith.constant 0 : index
    %c9 = arith.constant 9 : index
    %c0_5 = arith.constant 0 : index
    %c0_6 = arith.constant 0 : index
    %3 = vector.load %arg11[%c0_4, %c9, %c0_5, %c0_6] : memref<1x10x10x4xf32, #tpu.memory_space<vmem>>, vector<1x1x10x4xf32>
    tpu.vector_store %arg11[%c0_4, %c9, %c0_5, %c0_6], %0 {strides = array<i32>} : memref<1x10x10x4xf32, #tpu.memory_space<vmem>>, vector<1x1x10x4xf32>,
    %c0_7 = arith.constant 0 : index
    %c0_8 = arith.constant 0 : index
    %c0_9 = arith.constant 0 : index
    %c0_10 = arith.constant 0 : index
    %4 = vector.load %arg11[%c0_7, %c0_8, %c0_9, %c0_10] : memref<1x10x10x4xf32, #tpu.memory_space<vmem>>, vector<1x10x1x4xf32>
    tpu.vector_store %arg11[%c0_7, %c0_8, %c0_9, %c0_10], %1 {strides = array<i32>} : memref<1x10x10x4xf32, #tpu.memory_space<vmem>>, vector<1x10x1x4xf32>,
    %c0_11 = arith.constant 0 : index
    %c0_12 = arith.constant 0 : index
    %c9_13 = arith.constant 9 : index
    %c0_14 = arith.constant 0 : index
    %5 = vector.load %arg11[%c0_11, %c0_12, %c9_13, %c0_14] : memref<1x10x10x4xf32, #tpu.memory_space<vmem>>, vector<1x10x1x4xf32>
    tpu.vector_store %arg11[%c0_11, %c0_12, %c9_13, %c0_14], %1 {strides = array<i32>} : memref<1x10x10x4xf32, #tpu.memory_space<vmem>>, vector<1x10x1x4xf32>,
    %c0_15 = arith.constant 0 : index
    %c0_16 = arith.constant 0 : index
    %c0_17 = arith.constant 0 : index
    %c0_18 = arith.constant 0 : index
    %6 = vector.load %arg1[%c0_15, %c0_16, %c0_17, %c0_18] : memref<1x8x8x4xf32, #tpu.memory_space<vmem>>, vector<1x8x8x4xf32>
    %c0_19 = arith.constant 0 : index
    %c1 = arith.constant 1 : index
    %c1_20 = arith.constant 1 : index
    %c0_21 = arith.constant 0 : index
    %7 = vector.load %arg11[%c0_19, %c1, %c1_20, %c0_21] : memref<1x10x10x4xf32, #tpu.memory_space<vmem>>, vector<1x8x8x4xf32>
    tpu.vector_store %arg11[%c0_19, %c1, %c1_20, %c0_21], %6 {strides = array<i32>} : memref<1x10x10x4xf32, #tpu.memory_space<vmem>>, vector<1x8x8x4xf32>,
    %c0_22 = arith.constant 0 : index
    %c0_23 = arith.constant 0 : index
    %c0_24 = arith.constant 0 : index
    %c0_25 = arith.constant 0 : index
    %8 = vector.load %arg11[%c0_22, %c0_23, %c0_24, %c0_25] : memref<1x10x10x4xf32, #tpu.memory_space<vmem>>, vector<1x8x8x4xf32>
    %c0_26 = arith.constant 0 : index
    %c0_27 = arith.constant 0 : index
    %c1_28 = arith.constant 1 : index
    %c0_29 = arith.constant 0 : index
    %9 = vector.load %arg11[%c0_26, %c0_27, %c1_28, %c0_29] : memref<1x10x10x4xf32, #tpu.memory_space<vmem>>, vector<1x8x8x4xf32>
    %c0_30 = arith.constant 0 : index
    %c0_31 = arith.constant 0 : index
    %c2 = arith.constant 2 : index
    %c0_32 = arith.constant 0 : index
    %10 = vector.load %arg11[%c0_30, %c0_31, %c2, %c0_32] : memref<1x10x10x4xf32, #tpu.memory_space<vmem>>, vector<1x8x8x4xf32>
    %c0_33 = arith.constant 0 : index
    %c1_34 = arith.constant 1 : index
    %c0_35 = arith.constant 0 : index
    %c0_36 = arith.constant 0 : index
    %11 = vector.load %arg11[%c0_33, %c1_34, %c0_35, %c0_36] : memref<1x10x10x4xf32, #tpu.memory_space<vmem>>, vector<1x8x8x4xf32>
    %c0_37 = arith.constant 0 : index
    %c1_38 = arith.constant 1 : index
    %c1_39 = arith.constant 1 : index
    %c0_40 = arith.constant 0 : index
    %12 = vector.load %arg11[%c0_37, %c1_38, %c1_39, %c0_40] : memref<1x10x10x4xf32, #tpu.memory_space<vmem>>, vector<1x8x8x4xf32>
    %c0_41 = arith.constant 0 : index
    %c1_42 = arith.constant 1 : index
    %c2_43 = arith.constant 2 : index
    %c0_44 = arith.constant 0 : index
    %13 = vector.load %arg11[%c0_41, %c1_42, %c2_43, %c0_44] : memref<1x10x10x4xf32, #tpu.memory_space<vmem>>, vector<1x8x8x4xf32>
    %c0_45 = arith.constant 0 : index
    %c2_46 = arith.constant 2 : index
    %c0_47 = arith.constant 0 : index
    %c0_48 = arith.constant 0 : index
    %14 = vector.load %arg11[%c0_45, %c2_46, %c0_47, %c0_48] : memref<1x10x10x4xf32, #tpu.memory_space<vmem>>, vector<1x8x8x4xf32>
    %c0_49 = arith.constant 0 : index
    %c2_50 = arith.constant 2 : index
    %c1_51 = arith.constant 1 : index
    %c0_52 = arith.constant 0 : index
    %15 = vector.load %arg11[%c0_49, %c2_50, %c1_51, %c0_52] : memref<1x10x10x4xf32, #tpu.memory_space<vmem>>, vector<1x8x8x4xf32>
    %c0_53 = arith.constant 0 : index
    %c2_54 = arith.constant 2 : index
    %c2_55 = arith.constant 2 : index
    %c0_56 = arith.constant 0 : index
    %16 = vector.load %arg11[%c0_53, %c2_54, %c2_55, %c0_56] : memref<1x10x10x4xf32, #tpu.memory_space<vmem>>, vector<1x8x8x4xf32>
    %17 = tpu.concatenate %8, %9, %10, %11, %12, %13, %14, %15, %16 in 3 : vector<1x8x8x4xf32>, vector<1x8x8x4xf32>, vector<1x8x8x4xf32>, vector<1x8x8x4xf32>, vector<1x8x8x4xf32>, vector<1x8x8x4xf32>, vector<1x8x8x4xf32>, vector<1x8x8x4xf32>, vector<1x8x8x4xf32> -> vector<1x8x8x36xf32>
    %18 = vector.shape_cast %17 : vector<1x8x8x36xf32> to vector<64x36xf32>
    %c0_57 = arith.constant 0 : index
    %c0_58 = arith.constant 0 : index
    %19 = vector.load %arg2[%c0_57, %c0_58] : memref<36x8xf32, #tpu.memory_space<vmem>>, vector<36x8xf32>
    %cst_59 = arith.constant dense<0.000000e+00> : vector<64x8xf32>
    %20 = tpu.matmul %18, %19, %cst_59 {dimension_numbers = #tpu.dot_dimension_numbers<[1], [0], [0], [1], [0, 0, 1, 1], [], []>} : vector<64x36xf32>, vector<36x8xf32>, vector<64x8xf32> -> vector<64x8xf32>
    %c0_60 = arith.constant 0 : index
    %c0_61 = arith.constant 0 : index
    %21 = vector.load %arg3[%c0_60, %c0_61] : memref<1x8xf32, #tpu.memory_space<vmem>>, vector<1x8xf32>
    %22 = vector.broadcast %21 : vector<1x8xf32> to vector<64x8xf32>
    %23 = arith.addf %20, %22 : vector<64x8xf32>
    %cst_62 = arith.constant 0.000000e+00 : f32
    %24 = vector.broadcast %cst_62 : f32 to vector<64x8xf32>
    %25 = arith.maximumf %23, %24 : vector<64x8xf32>
    %cst_63 = arith.constant 0.000000e+00 : f32
    %26 = vector.broadcast %cst_63 : f32 to vector<1x1x10x8xf32>
    %cst_64 = arith.constant 0.000000e+00 : f32
    %27 = vector.broadcast %cst_64 : f32 to vector<1x10x1x8xf32>
    %c0_65 = arith.constant 0 : index
    %c0_66 = arith.constant 0 : index
    %c0_67 = arith.constant 0 : index
    %c0_68 = arith.constant 0 : index
    %28 = vector.load %arg12[%c0_65, %c0_66, %c0_67, %c0_68] : memref<1x10x10x8xf32, #tpu.memory_space<vmem>>, vector<1x1x10x8xf32>
    tpu.vector_store %arg12[%c0_65, %c0_66, %c0_67, %c0_68], %26 {strides = array<i32>} : memref<1x10x10x8xf32, #tpu.memory_space<vmem>>, vector<1x1x10x8xf32>,
    %c0_69 = arith.constant 0 : index
    %c9_70 = arith.constant 9 : index
    %c0_71 = arith.constant 0 : index
    %c0_72 = arith.constant 0 : index
    %29 = vector.load %arg12[%c0_69, %c9_70, %c0_71, %c0_72] : memref<1x10x10x8xf32, #tpu.memory_space<vmem>>, vector<1x1x10x8xf32>
    tpu.vector_store %arg12[%c0_69, %c9_70, %c0_71, %c0_72], %26 {strides = array<i32>} : memref<1x10x10x8xf32, #tpu.memory_space<vmem>>, vector<1x1x10x8xf32>,
    %c0_73 = arith.constant 0 : index
    %c0_74 = arith.constant 0 : index
    %c0_75 = arith.constant 0 : index
    %c0_76 = arith.constant 0 : index
    %30 = vector.load %arg12[%c0_73, %c0_74, %c0_75, %c0_76] : memref<1x10x10x8xf32, #tpu.memory_space<vmem>>, vector<1x10x1x8xf32>
    tpu.vector_store %arg12[%c0_73, %c0_74, %c0_75, %c0_76], %27 {strides = array<i32>} : memref<1x10x10x8xf32, #tpu.memory_space<vmem>>, vector<1x10x1x8xf32>,
    %c0_77 = arith.constant 0 : index
    %c0_78 = arith.constant 0 : index
    %c9_79 = arith.constant 9 : index
    %c0_80 = arith.constant 0 : index
    %31 = vector.load %arg12[%c0_77, %c0_78, %c9_79, %c0_80] : memref<1x10x10x8xf32, #tpu.memory_space<vmem>>, vector<1x10x1x8xf32>
    tpu.vector_store %arg12[%c0_77, %c0_78, %c9_79, %c0_80], %27 {strides = array<i32>} : memref<1x10x10x8xf32, #tpu.memory_space<vmem>>, vector<1x10x1x8xf32>,
    %32 = vector.shape_cast %25 : vector<64x8xf32> to vector<1x8x8x8xf32>
    %c0_81 = arith.constant 0 : index
    %c1_82 = arith.constant 1 : index
    %c1_83 = arith.constant 1 : index
    %c0_84 = arith.constant 0 : index
    %33 = vector.load %arg12[%c0_81, %c1_82, %c1_83, %c0_84] : memref<1x10x10x8xf32, #tpu.memory_space<vmem>>, vector<1x8x8x8xf32>
    tpu.vector_store %arg12[%c0_81, %c1_82, %c1_83, %c0_84], %32 {strides = array<i32>} : memref<1x10x10x8xf32, #tpu.memory_space<vmem>>, vector<1x8x8x8xf32>,
    %c0_85 = arith.constant 0 : index
    %c0_86 = arith.constant 0 : index
    %c0_87 = arith.constant 0 : index
    %c0_88 = arith.constant 0 : index
    %34 = vector.load %arg12[%c0_85, %c0_86, %c0_87, %c0_88] : memref<1x10x10x8xf32, #tpu.memory_space<vmem>>, vector<1x8x8x8xf32>
    %35 = vector.shape_cast %34 : vector<1x8x8x8xf32> to vector<64x8xf32>
    %c0_89 = arith.constant 0 : index
    %c0_90 = arith.constant 0 : index
    %c0_91 = arith.constant 0 : index
    %36 = vector.load %arg4[%c0_89, %c0_90, %c0_91] : memref<9x8x8xf32, #tpu.memory_space<vmem>>, vector<1x8x8xf32>
    %37 = vector.shape_cast %36 : vector<1x8x8xf32> to vector<8x8xf32>
    %cst_92 = arith.constant dense<0.000000e+00> : vector<64x8xf32>
    %38 = tpu.matmul %35, %37, %cst_92 {dimension_numbers = #tpu.dot_dimension_numbers<[1], [0], [0], [1], [0, 0, 1, 1], [], []>} : vector<64x8xf32>, vector<8x8xf32>, vector<64x8xf32> -> vector<64x8xf32>
    %c0_93 = arith.constant 0 : index
    %c0_94 = arith.constant 0 : index
    %c1_95 = arith.constant 1 : index
    %c0_96 = arith.constant 0 : index
    %39 = vector.load %arg12[%c0_93, %c0_94, %c1_95, %c0_96] : memref<1x10x10x8xf32, #tpu.memory_space<vmem>>, vector<1x8x8x8xf32>
    %40 = vector.shape_cast %39 : vector<1x8x8x8xf32> to vector<64x8xf32>
    %c1_97 = arith.constant 1 : index
    %c0_98 = arith.constant 0 : index
    %c0_99 = arith.constant 0 : index
    %41 = vector.load %arg4[%c1_97, %c0_98, %c0_99] : memref<9x8x8xf32, #tpu.memory_space<vmem>>, vector<1x8x8xf32>
    %42 = vector.shape_cast %41 : vector<1x8x8xf32> to vector<8x8xf32>
    %cst_100 = arith.constant dense<0.000000e+00> : vector<64x8xf32>
    %43 = tpu.matmul %40, %42, %cst_100 {dimension_numbers = #tpu.dot_dimension_numbers<[1], [0], [0], [1], [0, 0, 1, 1], [], []>} : vector<64x8xf32>, vector<8x8xf32>, vector<64x8xf32> -> vector<64x8xf32>
    %44 = arith.addf %38, %43 : vector<64x8xf32>
    %c0_101 = arith.constant 0 : index
    %c0_102 = arith.constant 0 : index
    %c2_103 = arith.constant 2 : index
    %c0_104 = arith.constant 0 : index
    %45 = vector.load %arg12[%c0_101, %c0_102, %c2_103, %c0_104] : memref<1x10x10x8xf32, #tpu.memory_space<vmem>>, vector<1x8x8x8xf32>
    %46 = vector.shape_cast %45 : vector<1x8x8x8xf32> to vector<64x8xf32>
    %c2_105 = arith.constant 2 : index
    %c0_106 = arith.constant 0 : index
    %c0_107 = arith.constant 0 : index
    %47 = vector.load %arg4[%c2_105, %c0_106, %c0_107] : memref<9x8x8xf32, #tpu.memory_space<vmem>>, vector<1x8x8xf32>
    %48 = vector.shape_cast %47 : vector<1x8x8xf32> to vector<8x8xf32>
    %cst_108 = arith.constant dense<0.000000e+00> : vector<64x8xf32>
    %49 = tpu.matmul %46, %48, %cst_108 {dimension_numbers = #tpu.dot_dimension_numbers<[1], [0], [0], [1], [0, 0, 1, 1], [], []>} : vector<64x8xf32>, vector<8x8xf32>, vector<64x8xf32> -> vector<64x8xf32>
    %50 = arith.addf %44, %49 : vector<64x8xf32>
    %c0_109 = arith.constant 0 : index
    %c1_110 = arith.constant 1 : index
    %c0_111 = arith.constant 0 : index
    %c0_112 = arith.constant 0 : index
    %51 = vector.load %arg12[%c0_109, %c1_110, %c0_111, %c0_112] : memref<1x10x10x8xf32, #tpu.memory_space<vmem>>, vector<1x8x8x8xf32>
    %52 = vector.shape_cast %51 : vector<1x8x8x8xf32> to vector<64x8xf32>
    %c3 = arith.constant 3 : index
    %c0_113 = arith.constant 0 : index
    %c0_114 = arith.constant 0 : index
    %53 = vector.load %arg4[%c3, %c0_113, %c0_114] : memref<9x8x8xf32, #tpu.memory_space<vmem>>, vector<1x8x8xf32>
    %54 = vector.shape_cast %53 : vector<1x8x8xf32> to vector<8x8xf32>
    %cst_115 = arith.constant dense<0.000000e+00> : vector<64x8xf32>
    %55 = tpu.matmul %52, %54, %cst_115 {dimension_numbers = #tpu.dot_dimension_numbers<[1], [0], [0], [1], [0, 0, 1, 1], [], []>} : vector<64x8xf32>, vector<8x8xf32>, vector<64x8xf32> -> vector<64x8xf32>
    %56 = arith.addf %50, %55 : vector<64x8xf32>
    %c0_116 = arith.constant 0 : index
    %c1_117 = arith.constant 1 : index
    %c1_118 = arith.constant 1 : index
    %c0_119 = arith.constant 0 : index
    %57 = vector.load %arg12[%c0_116, %c1_117, %c1_118, %c0_119] : memref<1x10x10x8xf32, #tpu.memory_space<vmem>>, vector<1x8x8x8xf32>
    %58 = vector.shape_cast %57 : vector<1x8x8x8xf32> to vector<64x8xf32>
    %c4 = arith.constant 4 : index
    %c0_120 = arith.constant 0 : index
    %c0_121 = arith.constant 0 : index
    %59 = vector.load %arg4[%c4, %c0_120, %c0_121] : memref<9x8x8xf32, #tpu.memory_space<vmem>>, vector<1x8x8xf32>
    %60 = vector.shape_cast %59 : vector<1x8x8xf32> to vector<8x8xf32>
    %cst_122 = arith.constant dense<0.000000e+00> : vector<64x8xf32>
    %61 = tpu.matmul %58, %60, %cst_122 {dimension_numbers = #tpu.dot_dimension_numbers<[1], [0], [0], [1], [0, 0, 1, 1], [], []>} : vector<64x8xf32>, vector<8x8xf32>, vector<64x8xf32> -> vector<64x8xf32>
    %62 = arith.addf %56, %61 : vector<64x8xf32>
    %c0_123 = arith.constant 0 : index
    %c1_124 = arith.constant 1 : index
    %c2_125 = arith.constant 2 : index
    %c0_126 = arith.constant 0 : index
    %63 = vector.load %arg12[%c0_123, %c1_124, %c2_125, %c0_126] : memref<1x10x10x8xf32, #tpu.memory_space<vmem>>, vector<1x8x8x8xf32>
    %64 = vector.shape_cast %63 : vector<1x8x8x8xf32> to vector<64x8xf32>
    %c5 = arith.constant 5 : index
    %c0_127 = arith.constant 0 : index
    %c0_128 = arith.constant 0 : index
    %65 = vector.load %arg4[%c5, %c0_127, %c0_128] : memref<9x8x8xf32, #tpu.memory_space<vmem>>, vector<1x8x8xf32>
    %66 = vector.shape_cast %65 : vector<1x8x8xf32> to vector<8x8xf32>
    %cst_129 = arith.constant dense<0.000000e+00> : vector<64x8xf32>
    %67 = tpu.matmul %64, %66, %cst_129 {dimension_numbers = #tpu.dot_dimension_numbers<[1], [0], [0], [1], [0, 0, 1, 1], [], []>} : vector<64x8xf32>, vector<8x8xf32>, vector<64x8xf32> -> vector<64x8xf32>
    %68 = arith.addf %62, %67 : vector<64x8xf32>
    %c0_130 = arith.constant 0 : index
    %c2_131 = arith.constant 2 : index
    %c0_132 = arith.constant 0 : index
    %c0_133 = arith.constant 0 : index
    %69 = vector.load %arg12[%c0_130, %c2_131, %c0_132, %c0_133] : memref<1x10x10x8xf32, #tpu.memory_space<vmem>>, vector<1x8x8x8xf32>
    %70 = vector.shape_cast %69 : vector<1x8x8x8xf32> to vector<64x8xf32>
    %c6 = arith.constant 6 : index
    %c0_134 = arith.constant 0 : index
    %c0_135 = arith.constant 0 : index
    %71 = vector.load %arg4[%c6, %c0_134, %c0_135] : memref<9x8x8xf32, #tpu.memory_space<vmem>>, vector<1x8x8xf32>
    %72 = vector.shape_cast %71 : vector<1x8x8xf32> to vector<8x8xf32>
    %cst_136 = arith.constant dense<0.000000e+00> : vector<64x8xf32>
    %73 = tpu.matmul %70, %72, %cst_136 {dimension_numbers = #tpu.dot_dimension_numbers<[1], [0], [0], [1], [0, 0, 1, 1], [], []>} : vector<64x8xf32>, vector<8x8xf32>, vector<64x8xf32> -> vector<64x8xf32>
    %74 = arith.addf %68, %73 : vector<64x8xf32>
    %c0_137 = arith.constant 0 : index
    %c2_138 = arith.constant 2 : index
    %c1_139 = arith.constant 1 : index
    %c0_140 = arith.constant 0 : index
    %75 = vector.load %arg12[%c0_137, %c2_138, %c1_139, %c0_140] : memref<1x10x10x8xf32, #tpu.memory_space<vmem>>, vector<1x8x8x8xf32>
    %76 = vector.shape_cast %75 : vector<1x8x8x8xf32> to vector<64x8xf32>
    %c7 = arith.constant 7 : index
    %c0_141 = arith.constant 0 : index
    %c0_142 = arith.constant 0 : index
    %77 = vector.load %arg4[%c7, %c0_141, %c0_142] : memref<9x8x8xf32, #tpu.memory_space<vmem>>, vector<1x8x8xf32>
    %78 = vector.shape_cast %77 : vector<1x8x8xf32> to vector<8x8xf32>
    %cst_143 = arith.constant dense<0.000000e+00> : vector<64x8xf32>
    %79 = tpu.matmul %76, %78, %cst_143 {dimension_numbers = #tpu.dot_dimension_numbers<[1], [0], [0], [1], [0, 0, 1, 1], [], []>} : vector<64x8xf32>, vector<8x8xf32>, vector<64x8xf32> -> vector<64x8xf32>
    %80 = arith.addf %74, %79 : vector<64x8xf32>
    %c0_144 = arith.constant 0 : index
    %c2_145 = arith.constant 2 : index
    %c2_146 = arith.constant 2 : index
    %c0_147 = arith.constant 0 : index
    %81 = vector.load %arg12[%c0_144, %c2_145, %c2_146, %c0_147] : memref<1x10x10x8xf32, #tpu.memory_space<vmem>>, vector<1x8x8x8xf32>
    %82 = vector.shape_cast %81 : vector<1x8x8x8xf32> to vector<64x8xf32>
    %c8 = arith.constant 8 : index
    %c0_148 = arith.constant 0 : index
    %c0_149 = arith.constant 0 : index
    %83 = vector.load %arg4[%c8, %c0_148, %c0_149] : memref<9x8x8xf32, #tpu.memory_space<vmem>>, vector<1x8x8xf32>
    %84 = vector.shape_cast %83 : vector<1x8x8xf32> to vector<8x8xf32>
    %cst_150 = arith.constant dense<0.000000e+00> : vector<64x8xf32>
    %85 = tpu.matmul %82, %84, %cst_150 {dimension_numbers = #tpu.dot_dimension_numbers<[1], [0], [0], [1], [0, 0, 1, 1], [], []>} : vector<64x8xf32>, vector<8x8xf32>, vector<64x8xf32> -> vector<64x8xf32>
    %86 = arith.addf %80, %85 : vector<64x8xf32>
    %c0_151 = arith.constant 0 : index
    %c0_152 = arith.constant 0 : index
    %87 = vector.load %arg5[%c0_151, %c0_152] : memref<1x8xf32, #tpu.memory_space<vmem>>, vector<1x8xf32>
    %88 = vector.broadcast %87 : vector<1x8xf32> to vector<64x8xf32>
    %89 = arith.addf %86, %88 : vector<64x8xf32>
    %cst_153 = arith.constant 0.000000e+00 : f32
    %90 = vector.broadcast %cst_153 : f32 to vector<64x8xf32>
    %91 = arith.maximumf %89, %90 : vector<64x8xf32>
    %c0_154 = arith.constant 0 : index
    %c0_155 = arith.constant 0 : index
    %92 = vector.load %arg6[%c0_154, %c0_155] : memref<8x32xf32, #tpu.memory_space<vmem>>, vector<8x32xf32>
    %cst_156 = arith.constant dense<0.000000e+00> : vector<64x32xf32>
    %93 = tpu.matmul %91, %92, %cst_156 {dimension_numbers = #tpu.dot_dimension_numbers<[1], [0], [0], [1], [0, 0, 1, 1], [], []>} : vector<64x8xf32>, vector<8x32xf32>, vector<64x32xf32> -> vector<64x32xf32>
    %c0_157 = arith.constant 0 : index
    %c0_158 = arith.constant 0 : index
    %94 = vector.load %arg7[%c0_157, %c0_158] : memref<1x32xf32, #tpu.memory_space<vmem>>, vector<1x32xf32>
    %95 = vector.broadcast %94 : vector<1x32xf32> to vector<64x32xf32>
    %96 = arith.addf %93, %95 : vector<64x32xf32>
    %cst_159 = arith.constant 0.000000e+00 : f32
    %97 = vector.broadcast %cst_159 : f32 to vector<64x32xf32>
    %98 = arith.maximumf %96, %97 : vector<64x32xf32>
    %c0_160 = arith.constant 0 : index
    %c0_161 = arith.constant 0 : index
    %99 = vector.load %arg8[%c0_160, %c0_161] : memref<32x128xf32, #tpu.memory_space<vmem>>, vector<32x128xf32>
    %cst_162 = arith.constant dense<0.000000e+00> : vector<64x128xf32>
    %100 = tpu.matmul %98, %99, %cst_162 {dimension_numbers = #tpu.dot_dimension_numbers<[1], [0], [0], [1], [0, 0, 1, 1], [], []>} : vector<64x32xf32>, vector<32x128xf32>, vector<64x128xf32> -> vector<64x128xf32>
    %c0_163 = arith.constant 0 : index
    %c0_164 = arith.constant 0 : index
    %101 = vector.load %arg9[%c0_163, %c0_164] : memref<1x128xf32, #tpu.memory_space<vmem>>, vector<1x128xf32>
    %102 = vector.broadcast %101 : vector<1x128xf32> to vector<64x128xf32>
    %103 = arith.addf %100, %102 : vector<64x128xf32>
    %104 = vector.shape_cast %103 : vector<64x128xf32> to vector<1x8x8x128xf32>
    %c0_165 = arith.constant 0 : index
    %c0_166 = arith.constant 0 : index
    %c0_167 = arith.constant 0 : index
    %c0_168 = arith.constant 0 : index
    %105 = vector.load %arg10[%c0_165, %c0_166, %c0_167, %c0_168] : memref<1x8x8x128xf32, #tpu.memory_space<vmem>>, vector<1x8x8x128xf32>
    tpu.vector_store %arg10[%c0_165, %c0_166, %c0_167, %c0_168], %104 {strides = array<i32>} : memref<1x8x8x128xf32, #tpu.memory_space<vmem>>, vector<1x8x8x128xf32>,
    return
  }
  func.func @transform_0(%arg0: i32) -> (i32, i32, i32, i32) {
    %c0_i32 = arith.constant 0 : i32
    %c0_i32_0 = arith.constant 0 : i32
    %c0_i32_1 = arith.constant 0 : i32
    %c0_i32_2 = arith.constant 0 : i32
    return %arg0, %c0_i32, %c0_i32_0, %c0_i32_1 : i32, i32, i32, i32
  }
  func.func @transform_1(%arg0: i32) -> (i32, i32) {
    %c0_i32 = arith.constant 0 : i32
    %c0_i32_0 = arith.constant 0 : i32
    %c0_i32_1 = arith.constant 0 : i32
    return %c0_i32, %c0_i32_0 : i32, i32
  }
  func.func @transform_2(%arg0: i32) -> (i32, i32) {
    %c0_i32 = arith.constant 0 : i32
    %c0_i32_0 = arith.constant 0 : i32
    %c0_i32_1 = arith.constant 0 : i32
    return %c0_i32, %c0_i32_0 : i32, i32
  }
  func.func @transform_3(%arg0: i32) -> (i32, i32, i32) {
    %c0_i32 = arith.constant 0 : i32
    %c0_i32_0 = arith.constant 0 : i32
    %c0_i32_1 = arith.constant 0 : i32
    %c0_i32_2 = arith.constant 0 : i32
    return %c0_i32, %c0_i32_0, %c0_i32_1 : i32, i32, i32
  }
  func.func @transform_4(%arg0: i32) -> (i32, i32) {
    %c0_i32 = arith.constant 0 : i32
    %c0_i32_0 = arith.constant 0 : i32
    %c0_i32_1 = arith.constant 0 : i32
    return %c0_i32, %c0_i32_0 : i32, i32
  }
  func.func @transform_5(%arg0: i32) -> (i32, i32) {
    %c0_i32 = arith.constant 0 : i32
    %c0_i32_0 = arith.constant 0 : i32
    %c0_i32_1 = arith.constant 0 : i32
    return %c0_i32, %c0_i32_0 : i32, i32
  }
  func.func @transform_6(%arg0: i32) -> (i32, i32) {
    %c0_i32 = arith.constant 0 : i32
    %c0_i32_0 = arith.constant 0 : i32
    %c0_i32_1 = arith.constant 0 : i32
    return %c0_i32, %c0_i32_0 : i32, i32
  }
  func.func @transform_7(%arg0: i32) -> (i32, i32) {
    %c0_i32 = arith.constant 0 : i32
    %c0_i32_0 = arith.constant 0 : i32
    %c0_i32_1 = arith.constant 0 : i32
    return %c0_i32, %c0_i32_0 : i32, i32
  }
  func.func @transform_8(%arg0: i32) -> (i32, i32) {
    %c0_i32 = arith.constant 0 : i32
    %c0_i32_0 = arith.constant 0 : i32
    %c0_i32_1 = arith.constant 0 : i32
    return %c0_i32, %c0_i32_0 : i32, i32
  }
  func.func @transform_9(%arg0: i32) -> (i32, i32, i32, i32) {
    %c0_i32 = arith.constant 0 : i32
    %c0_i32_0 = arith.constant 0 : i32
    %c0_i32_1 = arith.constant 0 : i32
    %c0_i32_2 = arith.constant 0 : i32
    return %arg0, %c0_i32, %c0_i32_0, %c0_i32_1 : i32, i32, i32, i32
  }
}

</mosaic_0001>

<bundles_post_ra>
// kernel: tpu_custom_call.1
= control target key start
LH: loop header
LB: loop body
LE: loop exit
PB: predicated region body
PF: predicated region fallthrough
CT: control target
= control target key end

     0   :  { %14 = vsyncpa [#allocation5], 0  ;;  %s3910_s0 = inlined_call_operand.vmem [shape: f32[2,8,8,4], index: 0, kind: input, shape index: {}]   ;;  %s3911_s1 = inlined_call_operand.vmem [shape: f32[36,8], index: 1, kind: input, shape index: {}]   ;;  %s3912_s2 = inlined_call_operand.vmem [shape: f32[1,8], index: 2, kind: input, shape index: {}]   ;;  %s3913_s3 = inlined_call_operand.vmem [shape: f32[9,8,8], index: 3, kind: input, shape index: {}]   ;;  %s3914_s4 = inlined_call_operand.vmem [shape: f32[1,8], index: 4, kind: input, shape index: {}]   ;;  %s3915_s5 = inlined_call_operand.vmem [shape: f32[8,32], index: 5, kind: input, shape index: {}]   ;;  %s3916_s6 = inlined_call_operand.vmem [shape: f32[1,32], index: 6, kind: input, shape index: {}]   ;;  %s3917_s7 = inlined_call_operand.vmem [shape: f32[32,128], index: 7, kind: input, shape index: {}]   ;;  %s3918_s8 = inlined_call_operand.vmem [shape: f32[1,128], index: 8, kind: input, shape index: {}]   ;;  %s3919_s9 = inlined_call_operand.hbm [shape: f32[2,8,8,128], index: 9, kind: output, shape index: {}]  }
   0x1   :  { %16 = vsyncpa [#allocation5 + $0x1], 0  ;;  %s3259_s30 = smov 0   ;;  %s3261_s10 = smov 0  }
   0x2   :  { %s3263_s11 = smov 0   ;;  %s3265_s12 = smov 0  }
   0x3 LB: > { %s3280_s13 = sadd.s32 4294967295, %s3196_s12   ;;  %s2665_s14 = sadd.s32 4294967294, %s3196_s12   ;;  %s3196_s12 = sphi %s3265_s12, %s3934_s12   ;;  %s3192_s11 = sphi %s3263_s11, %s3933_s11   ;;  %s3188_s10 = sphi %s3261_s10, %s3932_s10   ;;  %s3184_s30 = sphi %s3259_s30, %s3931_s30  }
   0x4   : > { %s3284_s15 = sadd.s32 1, %s3196_s12   ;;  %s223_s16 = sadd.s32 1, %s3192_s11 }
   0x5   : > { %s220_s17 = ssub.s32 %s3196_s12, %s3284_s15  ;;  %p233_p0 = scmp.ne.s32.totalorder %s3192_s11, %s3188_s10 }
   0x6   : > { %p221_p1 = scmp.eq.s32.totalorder %s220_s17, 0  ;;  %p234_p2 = scmp.eq.s32.totalorder %s3280_s13, 1 }
   0x7   : > { %p239_p3 = scmp.ne.s32.totalorder %s3188_s10, %s3184_s30  ;;  %p240_p4 = scmp.eq.s32.totalorder %s2665_s14, 1 }
   0x8   : > { %s3295_s18 = scalar_select %p221_p1, %s3192_s11, %s223_s16  }
   0x9   : > { %p3297_p5 = por %p234_p2, %p233_p0  ;;  %p3301_p6 = por %p240_p4, %p239_p3 }
   0xa   : > { %p2668_p7 = scmp.ge.s32.totalorder %s3196_s12, 1  ;;  %p290_p8 = scmp.lt.s32.totalorder %s3196_s12, 3 }
   0xc   : > { %p291_p9 = pnand %p2668_p7, %p290_p8 }
   0xe   : > { %294 = sbr.rel (%p291_p9) target bundleno = 1169 (0x491), region = 56 }
  0x13   : > { %vm331_vm0 = vcmask 31744   ;;  %vm333_vm1 = vcmask 25600   ;;  %vm338_vm2 = vcmask 24576   ;;  %v3198_v0 = vmov 0.0   ;;  %p326_p10 = scmp.lt.s32.totalorder %s3280_s13, 1  ;;  %s3199_s26 = smov 4  }
  0x14   : > { %332 = vst.msk [vmem:[#allocation2] sm:$0xff] %vm331_vm0, %v3198_v0  ;;  %336 = vst.msk [vmem:[#allocation2 + $0x90] sm:$0xff] %vm331_vm0, %v3198_v0  ;;  %vm713_vm3 = vcmask 64512   ;;  %s3200_s27 = smov 8   ;;  %s3201_s28 = smov 12   ;;  %vm813_vm4 = vcmask 1043456  }
  0x15   : > { %334 = vst.msk [vmem:[#allocation2 + $0x8] sm:$0x3] %vm333_vm1, %v3198_v0  ;;  %337 = vst.msk [vmem:[#allocation2 + $0x98] sm:$0x3] %vm333_vm1, %v3198_v0  ;;  %s327_s21 = scalar_select %p326_p10, %s3280_s13, 1  ;;  %v779_v21 = vld [vmem:[%s3911_s1 + $0x18] sm:$0xff] }
  0x16   : > { %340 = vst.msk [vmem:[#allocation2 + $0x10] sm:$0x1] %vm338_vm2, %v3198_v0  ;;  %341 = vst.msk [vmem:[#allocation2 + $0x20] sm:$0x1] %vm338_vm2, %v3198_v0  ;;  %s3202_s29 = smov 16   ;;  %s3920_s14 = smov 20  }
  0x17   : > { %342 = vst.msk [vmem:[#allocation2 + $0x30] sm:$0x1] %vm338_vm2, %v3198_v0  ;;  %343 = vst.msk [vmem:[#allocation2 + $0x40] sm:$0x1] %vm338_vm2, %v3198_v0  ;;  %s2786_s22 = sshll.u32 %s327_s21, 6  ;;  %s3204_s21 = smov 24  }
  0x18   : > { %344 = vst.msk [vmem:[#allocation2 + $0x50] sm:$0x1] %vm338_vm2, %v3198_v0  ;;  %345 = vst.msk [vmem:[#allocation2 + $0x60] sm:$0x1] %vm338_vm2, %v3198_v0  ;;  %s330_s25 = scalar_lea.vmem %s3910_s0, %s2786_s22  ;;  %v780_v18 = vld [vmem:[%s3911_s1 + $0x20] sm:$0xf] }
  0x19   : > { %346 = vst.msk [vmem:[#allocation2 + $0x70] sm:$0x1] %vm338_vm2, %v3198_v0  ;;  %347 = vst.msk [vmem:[#allocation2 + $0x80] sm:$0x1] %vm338_vm2, %v3198_v0  ;;  %v359_v1 = vld [vmem:[%s330_s25] sm:$0xff]  ;;  %v360_v2 = vld [vmem:[%s330_s25 + $0x8] sm:$0xff]  ;;  %2903 = vmatprep.subr.msk.mxu0 %vm813_vm4, %v780_v18 }
  0x1a   : > { %350 = vst.msk [vmem:[#allocation2 + $0x19] sm:$0x1] %vm338_vm2, %v3198_v0  ;;  %351 = vst.msk [vmem:[#allocation2 + $0x29] sm:$0x1] %vm338_vm2, %v3198_v0  ;;  %v361_v3 = vld [vmem:[%s330_s25 + $0x10] sm:$0xff]  ;;  %v362_v5 = vld [vmem:[%s330_s25 + $0x18] sm:$0xff]  ;;  %2904 = vmatpush3.msk.msra.mxu0 %vm813_vm4, %v780_v18 }
  0x1b   : > { %352 = vst.msk [vmem:[#allocation2 + $0x39] sm:$0x1] %vm338_vm2, %v3198_v0  ;;  %353 = vst.msk [vmem:[#allocation2 + $0x49] sm:$0x1] %vm338_vm2, %v3198_v0  ;;  %v363_v6 = vld [vmem:[%s330_s25 + $0x20] sm:$0xff]  ;;  %v364_v8 = vld [vmem:[%s330_s25 + $0x28] sm:$0xff]  ;;  %2905 = vmatprep.subr.mxu0 %v779_v21 }
  0x1c   : > { %354 = vst.msk [vmem:[#allocation2 + $0x59] sm:$0x1] %vm338_vm2, %v3198_v0  ;;  %355 = vst.msk [vmem:[#allocation2 + $0x69] sm:$0x1] %vm338_vm2, %v3198_v0  ;;  %v384_v4 = vld [vmem:[#allocation2 + $0x1] sm:$0xff]  ;;  %v365_v9 = vld [vmem:[%s330_s25 + $0x30] sm:$0xff]  ;;  %2906 = vmatpush3.msra.mxu0 %v779_v21 }
  0x1d   : > { %356 = vst.msk [vmem:[#allocation2 + $0x79] sm:$0x1] %vm338_vm2, %v3198_v0  ;;  %357 = vst.msk [vmem:[#allocation2 + $0x89] sm:$0x1] %vm338_vm2, %v3198_v0  ;;  %457 = vrot.lane.b32.xlu0 %v384_v4, %s3199_s26  ;;  %v366_v10 = vld [vmem:[%s330_s25 + $0x38] sm:$0xff]  ;;  %v778_v22 = vld [vmem:[%s3911_s1 + $0x10] sm:$0xff] }
  0x1e   : > { %349 = vst.msk [vmem:[#allocation2 + $0x9] sm:$0x1] %vm338_vm2, %v3198_v0  ;;  %339 = vst.msk [vmem:[#allocation2] sm:$0x1] %vm338_vm2, %v3198_v0  ;;  %2907 = vmatprep.subr.mxu0 %v778_v22  ;;  %v777_v23 = vld [vmem:[%s3911_s1 + $0x8] sm:$0xff]  ;;  %v776_v25 = vld [vmem:[%s3911_s1] sm:$0xff] }
  0x1f   : > { %348 = vst.msk [vmem:[#allocation2 + $0x90] sm:$0x1] %vm338_vm2, %v3198_v0  ;;  %358 = vst.msk [vmem:[#allocation2 + $0x99] sm:$0x1] %vm338_vm2, %v3198_v0  ;;  %2908 = vmatpush3.msra.mxu0 %v778_v22  ;;  %s3206_s24 = smov 32   ;;  %s3924_s25 = smov 20  }
  0x20   : > { %930 = vst.msk [vmem:[#allocation3] sm:$0xff] %vm713_vm3, %v3198_v0  ;;  %934 = vst.msk [vmem:[#allocation3 + $0x90] sm:$0xff] %vm713_vm3, %v3198_v0  ;;  %2909 = vmatprep.subr.mxu0 %v777_v23  ;;  %v440_v43 = vld [vmem:[#allocation2 + $0x91] sm:$0xff]  ;;  %vm722_vm5 = vcmask 97280   ;;  %vm731_vm6 = vcmask 130048   ;;  %vm740_vm7 = vcmask 162816  }
  0x21   : > { %368 = vst.msk [vmem:[#allocation2 + $0x11] sm:$0xff] %vm331_vm0, %v359_v1  ;;  %369 = vst.msk [vmem:[#allocation2 + $0x21] sm:$0xff] %vm331_vm0, %v360_v2  ;;  %2910 = vmatpush3.msra.mxu0 %v777_v23  ;;  %vm749_vm8 = vcmask 195584   ;;  %vm758_vm9 = vcmask 228352   ;;  %vm767_vm10 = vcmask 261120   ;;  %vm788_vm11 = vcmask 293888  }
  0x22   : > { %370 = vst.msk [vmem:[#allocation2 + $0x31] sm:$0xff] %vm331_vm0, %v361_v3  ;;  %371 = vst.msk [vmem:[#allocation2 + $0x41] sm:$0xff] %vm331_vm0, %v362_v5  ;;  %2911 = vmatprep.subr.mxu0 %v776_v25  ;;  %vm931_vm12 = vcmask 58368   ;;  %vm936_vm13 = vcmask 57344   ;;  %s2787_s17 = sshll.u32 %s3280_s13, 10 }
  0x23   : > { %372 = vst.msk [vmem:[#allocation2 + $0x51] sm:$0xff] %vm331_vm0, %v363_v6  ;;  %373 = vst.msk [vmem:[#allocation2 + $0x61] sm:$0xff] %vm331_vm0, %v364_v8  ;;  %2912 = vmatpush3.msra.mxu0 %v776_v25 }
  0x24   : > { %374 = vst.msk [vmem:[#allocation2 + $0x71] sm:$0xff] %vm331_vm0, %v365_v9  ;;  %375 = vst.msk [vmem:[#allocation2 + $0x81] sm:$0xff] %vm331_vm0, %v366_v10 }
  0x25   : > { %v392_v7 = vld [vmem:[#allocation2 + $0x2] sm:$0xff]  ;;  %932 = vst.msk [vmem:[#allocation3 + $0x8] sm:$0x3] %vm931_vm12, %v3198_v0  ;;  %935 = vst.msk [vmem:[#allocation3 + $0x98] sm:$0x3] %vm931_vm12, %v3198_v0 }
  0x26   : > { %489 = vrot.lane.b32.xlu1 %v392_v7, %s3200_s27  ;;  %v432_v42 = vld [vmem:[#allocation2 + $0x90] sm:$0xff]  ;;  %v376_v59 = vld [vmem:[#allocation2] sm:$0xff]  ;;  %937 = vst.msk [vmem:[#allocation3] sm:$0x1] %vm936_vm13, %v3198_v0  ;;  %938 = vst.msk [vmem:[#allocation3 + $0x10] sm:$0x1] %vm936_vm13, %v3198_v0 }
  0x27   : > { %v448_v46 = vld [vmem:[#allocation2 + $0x92] sm:$0xff]  ;;  %939 = vst.msk [vmem:[#allocation3 + $0x20] sm:$0x1] %vm936_vm13, %v3198_v0  ;;  %940 = vst.msk [vmem:[#allocation3 + $0x30] sm:$0x1] %vm936_vm13, %v3198_v0 }
  0x28   : > { %v393_v11 = vld [vmem:[#allocation2 + $0x12] sm:$0xff]  ;;  %v3374_v13 = vld [vmem:[#allocation2 + $0x20] sm:$0xff]  ;;  %941 = vst.msk [vmem:[#allocation3 + $0x40] sm:$0x1] %vm936_vm13, %v3198_v0  ;;  %942 = vst.msk [vmem:[#allocation3 + $0x50] sm:$0x1] %vm936_vm13, %v3198_v0 }
  0x29   : > { %v385_v12 = vld [vmem:[#allocation2 + $0x11] sm:$0xff]  ;;  %v386_v15 = vld [vmem:[#allocation2 + $0x21] sm:$0xff]  ;;  %943 = vst.msk [vmem:[#allocation3 + $0x60] sm:$0x1] %vm936_vm13, %v3198_v0  ;;  %944 = vst.msk [vmem:[#allocation3 + $0x70] sm:$0x1] %vm936_vm13, %v3198_v0 }
  0x2a   : > { %491 = vrot.lane.b32.xlu1 %v393_v11, %s3200_s27  ;;  %459 = vrot.lane.b32.xlu0 %v385_v12, %s3199_s26  ;;  %v3376_v14 = vld [vmem:[#allocation2 + $0x10] sm:$0xff]  ;;  %v394_v16 = vld [vmem:[#allocation2 + $0x22] sm:$0xff]  ;;  %945 = vst.msk [vmem:[#allocation3 + $0x80] sm:$0x1] %vm936_vm13, %v3198_v0  ;;  %946 = vst.msk [vmem:[#allocation3 + $0x90] sm:$0x1] %vm936_vm13, %v3198_v0 }
  0x2b   : > { %v387_v17 = vld [vmem:[#allocation2 + $0x31] sm:$0xff]  ;;  %v3411_v24 = vld [vmem:[#allocation2 + $0x40] sm:$0xff]  ;;  %948 = vst.msk [vmem:[#allocation3 + $0x19] sm:$0x1] %vm936_vm13, %v3198_v0  ;;  %949 = vst.msk [vmem:[#allocation3 + $0x29] sm:$0x1] %vm936_vm13, %v3198_v0 }
  0x2c   : > { %v3394_v19 = vld [vmem:[#allocation2 + $0x30] sm:$0xff]  ;;  %v411_v26 = vld [vmem:[#allocation2 + $0x41] sm:$0xff]  ;;  %950 = vst.msk [vmem:[#allocation3 + $0x39] sm:$0x1] %vm936_vm13, %v3198_v0  ;;  %951 = vst.msk [vmem:[#allocation3 + $0x49] sm:$0x1] %vm936_vm13, %v3198_v0 }
  0x2d   : > { %v395_v20 = vld [vmem:[#allocation2 + $0x32] sm:$0xff]  ;;  %v396_v27 = vld [vmem:[#allocation2 + $0x42] sm:$0xff]  ;;  %952 = vst.msk [vmem:[#allocation3 + $0x59] sm:$0x1] %vm936_vm13, %v3198_v0  ;;  %953 = vst.msk [vmem:[#allocation3 + $0x69] sm:$0x1] %vm936_vm13, %v3198_v0 }
  0x2e   : > { %523 = vrot.lane.b32.xlu1 %v3374_v13, %s3201_s28  ;;  %521 = vrot.lane.b32.xlu0 %v3376_v14, %s3201_s28  ;;  %v389_v28 = vld [vmem:[#allocation2 + $0x51] sm:$0xff]  ;;  %v3438_v31 = vld [vmem:[#allocation2 + $0x60] sm:$0xff]  ;;  %954 = vst.msk [vmem:[#allocation3 + $0x79] sm:$0x1] %vm936_vm13, %v3198_v0  ;;  %955 = vst.msk [vmem:[#allocation3 + $0x89] sm:$0x1] %vm936_vm13, %v3198_v0 }
  0x2f   : > { %v3430_v29 = vld [vmem:[#allocation2 + $0x50] sm:$0xff]  ;;  %v413_v32 = vld [vmem:[#allocation2 + $0x61] sm:$0xff]  ;;  %947 = vst.msk [vmem:[#allocation3 + $0x9] sm:$0x1] %vm936_vm13, %v3198_v0  ;;  %956 = vst.msk [vmem:[#allocation3 + $0x99] sm:$0x1] %vm936_vm13, %v3198_v0 }
  0x30   : > { %v397_v30 = vld [vmem:[#allocation2 + $0x52] sm:$0xff]  ;;  %v398_v33 = vld [vmem:[#allocation2 + $0x62] sm:$0xff] }
  0x31   : > { %v391_v34 = vld [vmem:[#allocation2 + $0x71] sm:$0xff]  ;;  %v407_v37 = vld [vmem:[#allocation2 + $0x80] sm:$0xff] }
  0x32   : > { %461 = vrot.lane.b32.xlu1 %v386_v15, %s3199_s26  ;;  %553 = vrot.lane.b32.xlu0 %v385_v12, %s3202_s29  ;;  %v3454_v35 = vld [vmem:[#allocation2 + $0x70] sm:$0xff]  ;;  %v415_v38 = vld [vmem:[#allocation2 + $0x81] sm:$0xff] }
  0x33   : > { %v399_v36 = vld [vmem:[#allocation2 + $0x72] sm:$0xff]  ;;  %v423_v39 = vld [vmem:[#allocation2 + $0x82] sm:$0xff] }
  0x36   : > { %585 = vrot.lane.b32.xlu1 %v393_v11, %s3920_s14  ;;  %555 = vrot.lane.b32.xlu0 %v386_v15, %s3202_s29 }
  0x3a   : > { %493 = vrot.lane.b32.xlu1 %v394_v16, %s3200_s27  ;;  %463 = vrot.lane.b32.xlu0 %v387_v17, %s3199_s26 }
  0x3e   : > { %617 = vrot.lane.b32.xlu1 %v3374_v13, %s3204_s21  ;;  %587 = vrot.lane.b32.xlu0 %v394_v16, %s3920_s14  ;;  %s3205_s14 = smov 28  }
  0x42   : > { %525 = vrot.lane.b32.xlu1 %v3394_v19, %s3201_s28  ;;  %495 = vrot.lane.b32.xlu0 %v395_v20, %s3200_s27 }
  0x46   : > { %649 = vrot.lane.b32.xlu1 %v386_v15, %s3205_s14  ;;  %619 = vrot.lane.b32.xlu0 %v3394_v19, %s3204_s21 }
  0x4a   : > { %557 = vrot.lane.b32.xlu1 %v387_v17, %s3202_s29  ;;  %527 = vrot.lane.b32.xlu0 %v3411_v24, %s3201_s28 }
  0x4e   : > { %681 = vrot.lane.b32.xlu1 %v394_v16, %s3206_s24  ;;  %651 = vrot.lane.b32.xlu0 %v387_v17, %s3205_s14 }
  0x52   : > { %559 = vrot.lane.b32.xlu1 %v411_v26, %s3202_s29  ;;  %465 = vrot.lane.b32.xlu0 %v411_v26, %s3199_s26 }
  0x56   : > { %683 = vrot.lane.b32.xlu1 %v395_v20, %s3206_s24  ;;  %589 = vrot.lane.b32.xlu0 %v395_v20, %s3924_s25 }
  0x5a   : > { %497 = vrot.lane.b32.xlu1 %v396_v27, %s3200_s27  ;;  %467 = vrot.lane.b32.xlu0 %v389_v28, %s3199_s26 }
  0x5e   : > { %621 = vrot.lane.b32.xlu1 %v3411_v24, %s3204_s21  ;;  %591 = vrot.lane.b32.xlu0 %v396_v27, %s3924_s25 }
  0x62   : > { %529 = vrot.lane.b32.xlu1 %v3430_v29, %s3201_s28  ;;  %499 = vrot.lane.b32.xlu0 %v397_v30, %s3200_s27 }
  0x66   : > { %653 = vrot.lane.b32.xlu1 %v411_v26, %s3205_s14  ;;  %623 = vrot.lane.b32.xlu0 %v3430_v29, %s3204_s21 }
  0x6a   : > { %561 = vrot.lane.b32.xlu1 %v389_v28, %s3202_s29  ;;  %531 = vrot.lane.b32.xlu0 %v3438_v31, %s3201_s28 }
  0x6e   : > { %685 = vrot.lane.b32.xlu1 %v396_v27, %s3206_s24  ;;  %655 = vrot.lane.b32.xlu0 %v389_v28, %s3205_s14 }
  0x72   : > { %563 = vrot.lane.b32.xlu1 %v413_v32, %s3202_s29  ;;  %469 = vrot.lane.b32.xlu0 %v413_v32, %s3199_s26 }
  0x76   : > { %687 = vrot.lane.b32.xlu1 %v397_v30, %s3206_s24  ;;  %593 = vrot.lane.b32.xlu0 %v397_v30, %s3924_s25 }
  0x7a   : > { %501 = vrot.lane.b32.xlu1 %v398_v33, %s3200_s27  ;;  %471 = vrot.lane.b32.xlu0 %v391_v34, %s3199_s26 }
  0x7e   : > { %625 = vrot.lane.b32.xlu1 %v3438_v31, %s3204_s21  ;;  %595 = vrot.lane.b32.xlu0 %v398_v33, %s3924_s25 }
  0x82   : > { %533 = vrot.lane.b32.xlu1 %v3454_v35, %s3201_s28  ;;  %503 = vrot.lane.b32.xlu0 %v399_v36, %s3200_s27 }
  0x86   : > { %657 = vrot.lane.b32.xlu1 %v413_v32, %s3205_s14  ;;  %627 = vrot.lane.b32.xlu0 %v3454_v35, %s3204_s21 }
  0x8a   : > { %565 = vrot.lane.b32.xlu1 %v391_v34, %s3202_s29  ;;  %535 = vrot.lane.b32.xlu0 %v407_v37, %s3201_s28  ;;  %s323_s28 = sand.u32 1, %s3188_s10  }
  0x8b   : > { %s3869_s13 = scalar_lea.sflag [#allocation5], %s323_s28 }
  0x8e   : > { %689 = vrot.lane.b32.xlu1 %v398_v33, %s3206_s24  ;;  %659 = vrot.lane.b32.xlu0 %v391_v34, %s3205_s14 }
  0x8f   : > { %v458_v41 = vpop.permute.xlu0 %457 }
  0x90   : > { %v705_v60 = vsel %vm331_vm0, %v376_v59, %v458_v41 }
  0x92   : > { %597 = vrot.lane.b32.xlu1 %v399_v36, %s3924_s25  ;;  %567 = vrot.lane.b32.xlu0 %v415_v38, %s3202_s29  ;;  %s2669_s29 = sshll.u32 %s323_s28, 6 }
  0x93   : > { %s325_s16 = scalar_lea.vmem [#allocation4], %s2669_s29  ;;  %s3207_s29 = smov [#allocation4]  }
  0x94   : > { %s2603_s22 = sshll.u32 %s325_s16, 4  ;;  %s3865_s22 = int_to_ptr.vmem [resolvable:$true] %s2603_s22 }
  0x95   : > { %s3136_s26 = scalar_lea.vmem %s3865_s22, 1024 }
  0x96   : > { %599 = vrot.lane.b32.xlu1 %v423_v39, %s3924_s25  ;;  %691 = vrot.lane.b32.xlu0 %v399_v36, %s3206_s24  ;;  %s3863_s25 = scalar_lea.hbm %s3919_s9, %s2787_s17  ;;  %p3137_p11 = scmp.ne.s32.totalorder %s3865_s22, %s3136_s26 }
  0x98   : > { %v490_v40 = vpop.permute.xlu1 %489  ;;  %p3138_p12 = pnand %p3137_p11, %p3297_p5 }
  0x99   : > { %v714_v63 = vsel %vm713_vm3, %v705_v60, %v490_v40 }
  0x9a   : > { %631 = vrot.lane.b32.xlu1 %v432_v42, %s3204_s21  ;;  %629 = vrot.lane.b32.xlu0 %v407_v37, %s3204_s21  ;;  %p3139_p13 = pneg %p3138_p12 }
  0x9c   : > { %v492_v44 = vpop.permute.xlu1 %491  ;;  %v460_v45 = vpop.permute.xlu0 %459 }
  0x9d   : > { %v706_v7 = vsel %vm331_vm0, %v3376_v14, %v460_v45 }
  0x9e   : > { %663 = vrot.lane.b32.xlu1 %v440_v43, %s3205_s14  ;;  %661 = vrot.lane.b32.xlu0 %v415_v38, %s3205_s14  ;;  %v715_v12 = vsel %vm713_vm3, %v706_v7, %v492_v44  ;;  %s3140_s14 = sshll.u32 %s3207_s29, 4  ;;  %s3141_s14 = int_to_ptr.vmem [resolvable:$false] %s3140_s14 }
  0x9f   : > { %s3142_s21 = scalar_lea.vmem %s3141_s14, 2048  ;;  %p3143_p0 = scmp.lt.s32.totalorder %s3865_s22, %s3141_s14 }
  0xa0   : > { %v524_v47 = vpop.permute.xlu1 %523  ;;  %v522_v48 = vpop.permute.xlu0 %521  ;;  %p3144_p1 = scmp.lt.s32.totalorder %s3142_s21, %s3136_s26 }
  0xa1   : > { %v723_v1 = vsel %vm722_vm5, %v714_v63, %v522_v48  ;;  %v724_v15 = vsel %vm722_vm5, %v715_v12, %v524_v47 }
  0xa2   : > { %695 = vrot.lane.b32.xlu1 %v448_v46, %s3206_s24  ;;  %693 = vrot.lane.b32.xlu0 %v423_v39, %s3206_s24  ;;  %p3145_p2 = por %p3144_p1, %p3143_p0 }
  0xa4   : > { %v462_v49 = vpop.permute.xlu1 %461  ;;  %v554_v50 = vpop.permute.xlu0 %553  ;;  %p3146_p3 = pnand %p3145_p2, %p3139_p13 }
  0xa5   : > { %v732_v4 = vsel %vm731_vm6, %v723_v1, %v554_v50  ;;  %v707_v37 = vsel %vm331_vm0, %v3374_v13, %v462_v49 }
  0xa8   : > { %v586_v51 = vpop.permute.xlu1 %585  ;;  %v556_v52 = vpop.permute.xlu0 %555 }
  0xa9   : > { %v741_v5 = vsel %vm740_vm7, %v732_v4, %v586_v51  ;;  %v733_v18 = vsel %vm731_vm6, %v724_v15, %v556_v52 }
  0xac   : > { %v494_v53 = vpop.permute.xlu1 %493  ;;  %v464_v54 = vpop.permute.xlu0 %463 }
  0xad   : > { %v716_v38 = vsel %vm713_vm3, %v707_v37, %v494_v53  ;;  %v708_v13 = vsel %vm331_vm0, %v3394_v19, %v464_v54 }
  0xb0   : > { %v618_v55 = vpop.permute.xlu1 %617  ;;  %v588_v56 = vpop.permute.xlu0 %587 }
  0xb1   : > { %v750_v6 = vsel %vm749_vm8, %v741_v5, %v618_v55  ;;  %v742_v20 = vsel %vm740_vm7, %v733_v18, %v588_v56 }
  0xb4   : > { %v526_v57 = vpop.permute.xlu1 %525  ;;  %v496_v58 = vpop.permute.xlu0 %495 }
  0xb5   : > { %v725_v39 = vsel %vm722_vm5, %v716_v38, %v526_v57  ;;  %v717_v49 = vsel %vm713_vm3, %v708_v13, %v496_v58 }
  0xb8   : > { %v650_v61 = vpop.permute.xlu1 %649  ;;  %v620_v62 = vpop.permute.xlu0 %619 }
  0xb9   : > { %v759_v8 = vsel %vm758_vm9, %v750_v6, %v650_v61  ;;  %v751_v14 = vsel %vm749_vm8, %v742_v20, %v620_v62 }
  0xbc   : > { %v558_v2 = vpop.permute.xlu1 %557  ;;  %v528_v3 = vpop.permute.xlu0 %527 }
  0xbd   : > { %v734_v42 = vsel %vm731_vm6, %v725_v39, %v558_v2  ;;  %v726_v50 = vsel %vm722_vm5, %v717_v49, %v528_v3 }
  0xc0   : > { %v682_v9 = vpop.permute.xlu1 %681  ;;  %v652_v10 = vpop.permute.xlu0 %651 }
  0xc1   : > { %v768_v11 = vsel %vm767_vm10, %v759_v8, %v682_v9  ;;  %v760_v21 = vsel %vm758_vm9, %v751_v14, %v652_v10 }
  0xc2   : > { %2913 = vmatprep.mubr.msk.f32.mxu0 %vm788_vm11, %v768_v11 }
  0xc4   : > { %v560_v16 = vpop.permute.xlu1 %559  ;;  %v466_v17 = vpop.permute.xlu0 %465 }
  0xc5   : > { %v735_v53 = vsel %vm731_vm6, %v726_v50, %v560_v16  ;;  %v709_v4 = vsel %vm331_vm0, %v3411_v24, %v466_v17 }
  0xc8   : > { %v684_v22 = vpop.permute.xlu1 %683  ;;  %v590_v23 = vpop.permute.xlu0 %589 }
  0xc9   : > { %v769_v25 = vsel %vm767_vm10, %v760_v21, %v684_v22  ;;  %v743_v43 = vsel %vm740_vm7, %v734_v42, %v590_v23  ;;  %v2682_v42 = vld [vmem:[%s3913_s3 + $0x8] sm:$0xff] }
  0xca   : > { %2914 = vmatmul.mubr.msk.f32.vlgmr.msra.gmra.mxu0 %vm788_vm11, %v769_v25  ;;  %2925 = vmatprep.subr.mxu1 %v2682_v42 }
  0xcb   : > { %2926 = vmatpush3.msra.mxu1 %v2682_v42 }
  0xcc   : > { %v498_v26 = vpop.permute.xlu1 %497  ;;  %v468_v27 = vpop.permute.xlu0 %467 }
  0xcd   : > { %v718_v5 = vsel %vm713_vm3, %v709_v4, %v498_v26  ;;  %v710_v24 = vsel %vm331_vm0, %v3430_v29, %v468_v27 }
  0xd0   : > { %v622_v28 = vpop.permute.xlu1 %621  ;;  %v592_v30 = vpop.permute.xlu0 %591 }
  0xd1   : > { %v752_v44 = vsel %vm749_vm8, %v743_v43, %v622_v28  ;;  %v744_v55 = vsel %vm740_vm7, %v735_v53, %v592_v30  ;;  %v3593_v43 = vld [vmem:[%s3913_s3 + $0x10] sm:$0xff]  ;;  %v1243_v53 = vld [vmem:[#allocation3 + $0x2] sm:$0xff] }
  0xd2   : > { %2953 = vmatprep.subr.mxu0 %v3593_v43 }
  0xd3   : > { %2954 = vmatpush3.msra.mxu0 %v3593_v43 }
  0xd4   : > { %v530_v32 = vpop.permute.xlu1 %529  ;;  %v500_v33 = vpop.permute.xlu0 %499 }
  0xd5   : > { %v727_v6 = vsel %vm722_vm5, %v718_v5, %v530_v32  ;;  %v719_v17 = vsel %vm713_vm3, %v710_v24, %v500_v33 }
  0xd8   : > { %v654_v34 = vpop.permute.xlu1 %653  ;;  %v624_v36 = vpop.permute.xlu0 %623 }
  0xd9   : > { %v761_v45 = vsel %vm758_vm9, %v752_v44, %v654_v34  ;;  %v753_v56 = vsel %vm749_vm8, %v744_v55, %v624_v36  ;;  %v2717_v55 = vld [vmem:[%s3913_s3 + $0x20] sm:$0xff] }
  0xda   : > { %2981 = vmatprep.subr.mxu0 %v2717_v55 }
  0xdc   : > { %v562_v40 = vpop.permute.xlu1 %561  ;;  %v532_v41 = vpop.permute.xlu0 %531 }
  0xdd   : > { %v736_v9 = vsel %vm731_vm6, %v727_v6, %v562_v40  ;;  %v728_v20 = vsel %vm722_vm5, %v719_v17, %v532_v41 }
  0xe0   : > { %v686_v46 = vpop.permute.xlu1 %685  ;;  %v656_v47 = vpop.permute.xlu0 %655 }
  0xe1   : > { %v770_v48 = vsel %vm767_vm10, %v761_v45, %v686_v46  ;;  %v762_v57 = vsel %vm758_vm9, %v753_v56, %v656_v47  ;;  %v974_v56 = vld [vmem:[%s3913_s3] sm:$0xff] }
  0xe2   : > { %2916 = vmatprep.mubr.msk.f32.mxu0 %vm788_vm11, %v770_v48  ;;  %2939 = vmatprep.subr.mxu1 %v974_v56 }
  0xe4   : > { %v564_v51 = vpop.permute.xlu1 %563  ;;  %v470_v52 = vpop.permute.xlu0 %469 }
  0xe5   : > { %v737_v22 = vsel %vm731_vm6, %v728_v20, %v564_v51  ;;  %v711_v33 = vsel %vm331_vm0, %v3438_v31, %v470_v52  ;;  %v975_v52 = vld [vmem:[#allocation3 + $0x1] sm:$0xff] }
  0xe6   : > { %2927 = vmatprep.mubr.msk.f32.mxu1 %vm713_vm3, %v975_v52  ;;  %v2443_v52 = vld [vmem:[%s3917_s7 + $0x10] sm:$0xff] }
  0xe8   : > { %v688_v59 = vpop.permute.xlu1 %687  ;;  %v594_v60 = vpop.permute.xlu0 %593 }
  0xe9   : > { %v771_v19 = vsel %vm767_vm10, %v762_v57, %v688_v59  ;;  %v745_v10 = vsel %vm740_vm7, %v736_v9, %v594_v60  ;;  %v2672_v57 = vld [vmem:[%s3912_s2] ss:$0 sm:$0xff] }
  0xea   : > { %2917 = vmatmul.mubr.msk.f32.gmra.mxu0 %vm788_vm11, %v771_v19 }
  0xec   : > { %v502_v54 = vpop.permute.xlu1 %501  ;;  %v472_v58 = vpop.permute.xlu0 %471 }
  0xed   : > { %v712_v34 = vsel %vm331_vm0, %v3454_v35, %v472_v58  ;;  %v720_v36 = vsel %vm713_vm3, %v711_v33, %v502_v54  ;;  %v966_v33 = vld [vmem:[#allocation3] sm:$0xff] }
  0xf0   : > { %v626_v61 = vpop.permute.xlu1 %625  ;;  %v596_v62 = vpop.permute.xlu0 %595 }
  0xf1   : > { %v754_v11 = vsel %vm749_vm8, %v745_v10, %v626_v61  ;;  %v746_v23 = vsel %vm740_vm7, %v737_v22, %v596_v62 }
  0xf4   : > { %v534_v63 = vpop.permute.xlu1 %533  ;;  %v504_v1 = vpop.permute.xlu0 %503 }
  0xf5   : > { %v721_v37 = vsel %vm713_vm3, %v712_v34, %v504_v1  ;;  %v729_v31 = vsel %vm722_vm5, %v720_v36, %v534_v63 }
  0xf8   : > { %v658_v2 = vpop.permute.xlu1 %657  ;;  %v628_v3 = vpop.permute.xlu0 %627 }
  0xf9   : > { %v763_v12 = vsel %vm758_vm9, %v754_v11, %v658_v2  ;;  %v755_v25 = vsel %vm749_vm8, %v746_v23, %v628_v3  ;;  %v2735_v3 = vld [vmem:[%s3913_s3 + $0x30] sm:$0xff] }
  0xfc   : > { %v566_v7 = vpop.permute.xlu1 %565  ;;  %v536_v8 = vpop.permute.xlu0 %535 }
  0xfd   : > { %v730_v35 = vsel %vm722_vm5, %v721_v37, %v536_v8  ;;  %v738_v40 = vsel %vm731_vm6, %v729_v31, %v566_v7 }
 0x100   : > { %v690_v15 = vpop.permute.xlu1 %689  ;;  %v660_v16 = vpop.permute.xlu0 %659 }
 0x101   : > { %v772_v18 = vsel %vm767_vm10, %v763_v12, %v690_v15  ;;  %v764_v26 = vsel %vm758_vm9, %v755_v25, %v660_v16 }
 0x102   : > { %2919 = vmatprep.mubr.msk.f32.mxu0 %vm788_vm11, %v772_v18 }
 0x104   : > { %v598_v14 = vpop.permute.xlu1 %597  ;;  %v568_v21 = vpop.permute.xlu0 %567 }
 0x105   : > { %v739_v41 = vsel %vm731_vm6, %v730_v35, %v568_v21  ;;  %v747_v44 = vsel %vm740_vm7, %v738_v40, %v598_v14  ;;  %v2708_v35 = vld [vmem:[%s3913_s3 + $0x18] sm:$0xff] }
 0x108   : > { %v600_v28 = vpop.permute.xlu1 %599  ;;  %v692_v30 = vpop.permute.xlu0 %691 }
 0x109   : > { %v773_v29 = vsel %vm767_vm10, %v764_v26, %v692_v30  ;;  %v748_v45 = vsel %vm740_vm7, %v739_v41, %v600_v28 }
 0x10a   : > { %2920 = vmatmul.mubr.msk.f32.gmra.mxu0 %vm788_vm11, %v773_v29 }
 0x10c   : > { %v632_v27 = vpop.permute.xlu1 %631  ;;  %v630_v32 = vpop.permute.xlu0 %629 }
 0x10d   : > { %v757_v0 = vsel %vm749_vm8, %v748_v45, %v632_v27  ;;  %v756_v46 = vsel %vm749_vm8, %v747_v44, %v630_v32  ;;  %v2753_v32 = vld [vmem:[%s3913_s3 + $0x40] sm:$0xff]  ;;  %v1839_v45 = vld [vmem:[#allocation3 + $0x90] sm:$0xff] }
 0x110   : > { %v664_v38 = vpop.permute.xlu1 %663  ;;  %v662_v39 = vpop.permute.xlu0 %661 }
 0x111   : > { %v766_v47 = vsel %vm758_vm9, %v757_v0, %v664_v38  ;;  %v765_v48 = vsel %vm758_vm9, %v756_v46, %v662_v39  ;;  %v2726_v46 = vld [vmem:[%s3913_s3 + $0x28] sm:$0xff] }
 0x114   : > { %v696_v13 = vpop.permute.xlu1 %695  ;;  %v694_v49 = vpop.permute.xlu0 %693 }
 0x115   : > { %v775_v50 = vsel %vm767_vm10, %v766_v47, %v696_v13  ;;  %v774_v51 = vsel %vm767_vm10, %v765_v48, %v694_v49  ;;  %v2744_v47 = vld [vmem:[%s3913_s3 + $0x38] sm:$0xff] }
 0x116   : > { %2922 = vmatprep.mubr.msk.f32.mxu0 %vm788_vm11, %v774_v51  ;;  %v2133_v13 = vld [vmem:[#allocation3 + $0x92] sm:$0xff] }
 0x117   : > { %2923 = vmatmul.mubr.msk.f32.gmra.mxu0 %vm788_vm11, %v775_v50  ;;  %v1986_v49 = vld [vmem:[#allocation3 + $0x91] sm:$0xff]  ;;  %v2296_v50 = vld [vmem:[%s3915_s5] sm:$0xff] }
 0x118   : > { %2955 = vmatprep.mubr.msk.f32.mxu0 %vm713_vm3, %v1243_v53  ;;  %v2444_v51 = vld [vmem:[%s3917_s7 + $0x18] sm:$0xff]  ;;  %v2442_v53 = vld [vmem:[%s3917_s7 + $0x8] sm:$0xff] }
 0x18a   : > { %v2915_v59 = vpop.f32.mrf.mxu0 }
 0x18b   : > { %v889_v60 = vadd.f32 %v2915_v59, %v2672_v57 }
 0x18c   : > { %v883_v19 = vpop.f32.mrf.mxu0 }
 0x18d   : > { %v923_v54 = vmax.f32 %v889_v60, 0.0  ;;  %v884_v58 = vadd.f32 %v2672_v57, %v883_v19 }
 0x18f   : > { %959 = vst.msk [vmem:[#allocation3 + $0x21] sm:$0xff] %vm713_vm3, %v923_v54  ;;  %v922_v61 = vmax.f32 %v884_v58, 0.0 }
 0x191   : > { %958 = vst.msk [vmem:[#allocation3 + $0x11] sm:$0xff] %vm713_vm3, %v922_v61 }
 0x196   : > { %v3625_v1 = vld [vmem:[#allocation3 + $0x21] sm:$0xff] }
 0x197   : > { %v3627_v2 = vld [vmem:[#allocation3 + $0x22] sm:$0xff] }
 0x198   : > { %v976_v62 = vld [vmem:[#allocation3 + $0x11] sm:$0xff]  ;;  %v1832_v31 = vld [vmem:[#allocation3 + $0x20] sm:$0xff] }
 0x199   : > { %v3620_v63 = vld [vmem:[#allocation3 + $0x12] sm:$0xff]  ;;  %2928 = vmatmul.mubr.msk.f32.vlgmr.msra.gmra.mxu1 %vm713_vm3, %v976_v62 }
 0x19a   : > { %2956 = vmatmul.mubr.msk.f32.vlgmr.msra.gmra.mxu0 %vm713_vm3, %v3620_v63  ;;  %2930 = vmatprep.mubr.msk.f32.mxu1 %vm713_vm3, %v3625_v1  ;;  %v967_v37 = vld [vmem:[#allocation3 + $0x10] sm:$0xff] }
 0x19b   : > { %2958 = vmatprep.mubr.msk.f32.mxu0 %vm713_vm3, %v3627_v2  ;;  %2940 = vmatpush3.msra.mxu1 %v974_v56 }
 0x19c   : > { %2982 = vmatpush3.msra.mxu0 %v2717_v55  ;;  %3085 = vmatprep.subr.mxu1 %v3593_v43 }
 0x19d   : > { %3009 = vmatprep.subr.mxu0 %v2735_v3 }
 0x1aa   : > { %v2918_v4 = vpop.f32.mrf.mxu0 }
 0x1ab   : > { %v899_v5 = vadd.f32 %v2918_v4, %v2672_v57 }
 0x1ac   : > { %v893_v6 = vpop.f32.mrf.mxu0 }
 0x1ad   : > { %v925_v7 = vmax.f32 %v899_v5, 0.0  ;;  %v894_v8 = vadd.f32 %v2672_v57, %v893_v6 }
 0x1af   : > { %961 = vst.msk [vmem:[#allocation3 + $0x41] sm:$0xff] %vm713_vm3, %v925_v7  ;;  %v924_v9 = vmax.f32 %v894_v8, 0.0 }
 0x1b1   : > { %960 = vst.msk [vmem:[#allocation3 + $0x31] sm:$0xff] %vm713_vm3, %v924_v9 }
 0x1b6   : > { %v3647_v12 = vld [vmem:[#allocation3 + $0x41] sm:$0xff] }
 0x1b7   : > { %v3649_v15 = vld [vmem:[#allocation3 + $0x42] sm:$0xff] }
 0x1b8   : > { %v3639_v10 = vld [vmem:[#allocation3 + $0x31] sm:$0xff]  ;;  %v1834_v39 = vld [vmem:[#allocation3 + $0x40] sm:$0xff] }
 0x1b9   : > { %v3641_v11 = vld [vmem:[#allocation3 + $0x32] sm:$0xff]  ;;  %2931 = vmatmul.mubr.msk.f32.gmra.mxu1 %vm713_vm3, %v3639_v10 }
 0x1ba   : > { %2959 = vmatmul.mubr.msk.f32.gmra.mxu0 %vm713_vm3, %v3641_v11  ;;  %2933 = vmatprep.mubr.msk.f32.mxu1 %vm713_vm3, %v3647_v12  ;;  %v1833_v38 = vld [vmem:[#allocation3 + $0x30] sm:$0xff] }
 0x1bb   : > { %2961 = vmatprep.mubr.msk.f32.mxu0 %vm713_vm3, %v3649_v15 }
 0x1ca   : > { %v2921_v16 = vpop.f32.mrf.mxu0 }
 0x1cb   : > { %v909_v18 = vadd.f32 %v2921_v16, %v2672_v57 }
 0x1cc   : > { %v903_v24 = vpop.f32.mrf.mxu0 }
 0x1cd   : > { %v927_v17 = vmax.f32 %v909_v18, 0.0  ;;  %v904_v20 = vadd.f32 %v2672_v57, %v903_v24 }
 0x1cf   : > { %963 = vst.msk [vmem:[#allocation3 + $0x61] sm:$0xff] %vm713_vm3, %v927_v17  ;;  %v926_v14 = vmax.f32 %v904_v20, 0.0 }
 0x1d1   : > { %962 = vst.msk [vmem:[#allocation3 + $0x51] sm:$0xff] %vm713_vm3, %v926_v14 }
 0x1d6   : > { %v3665_v28 = vld [vmem:[#allocation3 + $0x61] sm:$0xff] }
 0x1d7   : > { %v2924_v21 = vpop.f32.mrf.mxu0  ;;  %v1836_v41 = vld [vmem:[#allocation3 + $0x60] sm:$0xff] }
 0x1d8   : > { %v919_v22 = vadd.f32 %v2924_v21, %v2672_v57  ;;  %v3657_v23 = vld [vmem:[#allocation3 + $0x51] sm:$0xff]  ;;  %v1249_v44 = vld [vmem:[#allocation3 + $0x62] sm:$0xff] }
 0x1d9   : > { %v3659_v25 = vld [vmem:[#allocation3 + $0x52] sm:$0xff]  ;;  %v913_v26 = vpop.f32.mrf.mxu0  ;;  %2934 = vmatmul.mubr.msk.f32.gmra.mxu1 %vm713_vm3, %v3657_v23 }
 0x1da   : > { %2962 = vmatmul.mubr.msk.f32.gmra.mxu0 %vm713_vm3, %v3659_v25  ;;  %v929_v30 = vmax.f32 %v919_v22, 0.0  ;;  %v914_v29 = vadd.f32 %v2672_v57, %v913_v26  ;;  %2936 = vmatprep.mubr.msk.f32.mxu1 %vm713_vm3, %v3665_v28  ;;  %v1835_v40 = vld [vmem:[#allocation3 + $0x50] sm:$0xff] }
 0x1db   : > { %2983 = vmatprep.mubr.msk.f32.mxu0 %vm713_vm3, %v976_v62 }
 0x1dc   : > { %965 = vst.msk [vmem:[#allocation3 + $0x81] sm:$0xff] %vm713_vm3, %v929_v30  ;;  %v928_v27 = vmax.f32 %v914_v29, 0.0 }
 0x1de   : > { %2984 = vmatmul.mubr.msk.f32.vlgmr.msra.gmra.mxu0 %vm713_vm3, %v3625_v1  ;;  %964 = vst.msk [vmem:[#allocation3 + $0x71] sm:$0xff] %vm713_vm3, %v928_v27 }
 0x1df   : > { %2986 = vmatprep.mubr.msk.f32.mxu0 %vm713_vm3, %v3639_v10  ;;  %3010 = vmatpush3.msra.mxu0 %v2735_v3 }
 0x1e0   : > { %3037 = vmatprep.subr.mxu0 %v2753_v32 }
 0x1e2   : > { %2987 = vmatmul.mubr.msk.f32.gmra.mxu0 %vm713_vm3, %v3647_v12 }
 0x1e3   : > { %2989 = vmatprep.mubr.msk.f32.mxu0 %vm713_vm3, %v3657_v23  ;;  %v3692_v36 = vld [vmem:[#allocation3 + $0x81] sm:$0xff] }
 0x1e4   : > { %v2132_v48 = vld [vmem:[#allocation3 + $0x82] sm:$0xff] }
 0x1e5   : > { %v3685_v34 = vld [vmem:[#allocation3 + $0x71] sm:$0xff] }
 0x1e6   : > { %2990 = vmatmul.mubr.msk.f32.gmra.mxu0 %vm713_vm3, %v3665_v28  ;;  %2937 = vmatmul.mubr.msk.f32.gmra.mxu1 %vm713_vm3, %v3685_v34  ;;  %v1837_v42 = vld [vmem:[#allocation3 + $0x70] sm:$0xff] }
 0x1e7   : > { %2992 = vmatprep.mubr.msk.f32.mxu0 %vm713_vm3, %v3685_v34  ;;  %2941 = vmatprep.mubr.msk.f32.mxu1 %vm713_vm3, %v966_v33  ;;  %v1250_v0 = vld [vmem:[#allocation3 + $0x72] sm:$0xff] }
 0x1ea   : > { %2993 = vmatmul.mubr.msk.f32.gmra.mxu0 %vm713_vm3, %v3692_v36  ;;  %2942 = vmatmul.mubr.msk.f32.vlgmr.msra.gmra.mxu1 %vm713_vm3, %v967_v37 }
 0x1eb   : > { %3011 = vmatprep.mubr.msk.f32.mxu0 %vm713_vm3, %v1832_v31  ;;  %3086 = vmatpush3.msra.mxu1 %v3593_v43  ;;  %v1838_v43 = vld [vmem:[#allocation3 + $0x80] sm:$0xff] }
 0x1ec   : > { %2944 = vmatprep.mubr.msk.f32.mxu1 %vm713_vm3, %v1832_v31  ;;  %2967 = vmatprep.subr.mxu1 %v2708_v35 }
 0x1ee   : > { %3012 = vmatmul.mubr.msk.f32.vlgmr.msra.gmra.mxu0 %vm713_vm3, %v1833_v38  ;;  %2945 = vmatmul.mubr.msk.f32.gmra.mxu1 %vm713_vm3, %v1833_v38 }
 0x1ef   : > { %3014 = vmatprep.mubr.msk.f32.mxu0 %vm713_vm3, %v1834_v39  ;;  %2947 = vmatprep.mubr.msk.f32.mxu1 %vm713_vm3, %v1834_v39 }
 0x1f0   : > { %3038 = vmatpush3.msra.mxu0 %v2753_v32 }
 0x1f1   : > { %3065 = vmatprep.subr.mxu0 %v2444_v51 }
 0x1f2   : > { %3015 = vmatmul.mubr.msk.f32.gmra.mxu0 %vm713_vm3, %v1835_v40  ;;  %2948 = vmatmul.mubr.msk.f32.gmra.mxu1 %vm713_vm3, %v1835_v40 }
 0x1f3   : > { %3017 = vmatprep.mubr.msk.f32.mxu0 %vm713_vm3, %v1836_v41  ;;  %2950 = vmatprep.mubr.msk.f32.mxu1 %vm713_vm3, %v1836_v41 }
 0x1f6   : > { %3018 = vmatmul.mubr.msk.f32.gmra.mxu0 %vm713_vm3, %v1837_v42  ;;  %2951 = vmatmul.mubr.msk.f32.gmra.mxu1 %vm713_vm3, %v1837_v42 }
 0x1f7   : > { %3020 = vmatprep.mubr.msk.f32.mxu0 %vm713_vm3, %v1838_v43  ;;  %2964 = vmatprep.mubr.msk.f32.mxu1 %vm713_vm3, %v1249_v44 }
 0x1fa   : > { %3021 = vmatmul.mubr.msk.f32.gmra.mxu0 %vm713_vm3, %v1839_v45  ;;  %2965 = vmatmul.mubr.msk.f32.vlgmr.msra.gmra.mxu1 %vm713_vm3, %v1250_v0 }
 0x1fb   : > { %3039 = vmatprep.mubr.msk.f32.mxu0 %vm713_vm3, %v3627_v2  ;;  %2968 = vmatpush3.msra.mxu1 %v2708_v35 }
 0x1fc   : > { %2969 = vmatprep.mubr.msk.f32.mxu1 %vm713_vm3, %v967_v37  ;;  %2995 = vmatprep.subr.mxu1 %v2726_v46 }
 0x1fe   : > { %3040 = vmatmul.mubr.msk.f32.vlgmr.msra.gmra.mxu0 %vm713_vm3, %v3641_v11  ;;  %2970 = vmatmul.mubr.msk.f32.vlgmr.msra.gmra.mxu1 %vm713_vm3, %v1832_v31 }
 0x1ff   : > { %3042 = vmatprep.mubr.msk.f32.mxu0 %vm713_vm3, %v3649_v15  ;;  %2996 = vmatpush3.msra.mxu1 %v2726_v46 }
 0x200   : > { %2972 = vmatprep.mubr.msk.f32.mxu1 %vm713_vm3, %v1833_v38  ;;  %3023 = vmatprep.subr.mxu1 %v2744_v47 }
 0x201   : > { %3066 = vmatpush3.msra.mxu0 %v2444_v51 }
 0x202   : > { %3043 = vmatmul.mubr.msk.f32.gmra.mxu0 %vm713_vm3, %v3659_v25  ;;  %2973 = vmatmul.mubr.msk.f32.gmra.mxu1 %vm713_vm3, %v1834_v39 }
 0x203   : > { %3045 = vmatprep.mubr.msk.f32.mxu0 %vm713_vm3, %v1249_v44  ;;  %2975 = vmatprep.mubr.msk.f32.mxu1 %vm713_vm3, %v1835_v40 }
 0x204   : > { %3067 = vmatprep.subr.mxu0 %v2443_v52 }
 0x205   : > { %3068 = vmatpush3.msra.mxu0 %v2443_v52 }
 0x206   : > { %3046 = vmatmul.mubr.msk.f32.gmra.mxu0 %vm713_vm3, %v1250_v0  ;;  %2976 = vmatmul.mubr.msk.f32.gmra.mxu1 %vm713_vm3, %v1836_v41 }
 0x207   : > { %3048 = vmatprep.mubr.msk.f32.mxu0 %vm713_vm3, %v2132_v48  ;;  %2978 = vmatprep.mubr.msk.f32.mxu1 %vm713_vm3, %v1837_v42 }
 0x208   : > { %3069 = vmatprep.subr.mxu0 %v2442_v53 }
 0x209   : > { %3070 = vmatpush3.msra.mxu0 %v2442_v53 }
 0x20a   : > { %3049 = vmatmul.mubr.msk.f32.gmra.mxu0 %vm713_vm3, %v2133_v13  ;;  %2979 = vmatmul.mubr.msk.f32.gmra.mxu1 %vm713_vm3, %v1838_v43 }
 0x20b   : > { %2997 = vmatprep.mubr.msk.f32.mxu1 %vm713_vm3, %v3620_v63 }
 0x20e   : > { %2998 = vmatmul.mubr.msk.f32.vlgmr.msra.gmra.mxu1 %vm713_vm3, %v3627_v2 }
 0x20f   : > { %3024 = vmatpush3.msra.mxu1 %v2744_v47  ;;  %3000 = vmatprep.mubr.msk.f32.mxu1 %vm713_vm3, %v3641_v11 }
 0x210   : > { %3051 = vmatprep.subr.mxu1 %v2296_v50 }
 0x212   : > { %3001 = vmatmul.mubr.msk.f32.gmra.mxu1 %vm713_vm3, %v3649_v15 }
 0x213   : > { %3003 = vmatprep.mubr.msk.f32.mxu1 %vm713_vm3, %v3659_v25 }
 0x216   : > { %3004 = vmatmul.mubr.msk.f32.gmra.mxu1 %vm713_vm3, %v1249_v44 }
 0x217   : > { %3006 = vmatprep.mubr.msk.f32.mxu1 %vm713_vm3, %v1250_v0 }
 0x21a   : > { %3007 = vmatmul.mubr.msk.f32.gmra.mxu1 %vm713_vm3, %v2132_v48 }
 0x21b   : > { %3025 = vmatprep.mubr.msk.f32.mxu1 %vm713_vm3, %v3625_v1 }
 0x21e   : > { %3026 = vmatmul.mubr.msk.f32.vlgmr.msra.gmra.mxu1 %vm713_vm3, %v3639_v10 }
 0x21f   : > { %3028 = vmatprep.mubr.msk.f32.mxu1 %vm713_vm3, %v3647_v12  ;;  %3052 = vmatpush3.msra.mxu1 %v2296_v50 }
 0x222   : > { %3029 = vmatmul.mubr.msk.f32.gmra.mxu1 %vm713_vm3, %v3657_v23 }
 0x223   : > { %3031 = vmatprep.mubr.msk.f32.mxu1 %vm713_vm3, %v3665_v28 }
 0x226   : > { %3032 = vmatmul.mubr.msk.f32.gmra.mxu1 %vm713_vm3, %v3685_v34 }
 0x227   : > { %3034 = vmatprep.mubr.msk.f32.mxu1 %vm713_vm3, %v3692_v36 }
 0x22a   : > { %3035 = vmatmul.mubr.msk.f32.gmra.mxu1 %vm713_vm3, %v1986_v49 }
 0x259   : > { %v2929_v59 = vpop.f32.mrf.mxu1 }
 0x25a   : > { %v2957_v55 = vpop.f32.mrf.mxu0 }
 0x25b   : > { %v1075_v19 = vpop.f32.mrf.mxu1 }
 0x25c   : > { %v1343_v56 = vpop.f32.mrf.mxu0 }
 0x279   : > { %v2932_v58 = vpop.f32.mrf.mxu1 }
 0x27a   : > { %v2960_v57 = vpop.f32.mrf.mxu0 }
 0x27b   : > { %v1085_v63 = vpop.f32.mrf.mxu1 }
 0x27c   : > { %v1353_v60 = vpop.f32.mrf.mxu0 }
 0x299   : > { %v2935_v2 = vpop.f32.mrf.mxu1 }
 0x29a   : > { %v3783_v54 = vpop.f32.mrf.mxu0 }
 0x29b   : > { %v1095_v5 = vpop.f32.mrf.mxu1 }
 0x29c   : > { %v3785_v61 = vpop.f32.mrf.mxu0 }
 0x29e   : > { %v2985_v62 = vpop.f32.mrf.mxu0 }
 0x2a0   : > { %v1637_v1 = vpop.f32.mrf.mxu0 }
 0x2a2   : > { %v3787_v3 = vpop.f32.mrf.mxu0 }
 0x2a4   : > { %v3789_v4 = vpop.f32.mrf.mxu0 }
 0x2a6   : > { %v3791_v6 = vpop.f32.mrf.mxu0  ;;  %v2938_v7 = vpop.f32.mrf.mxu1 }
 0x2a8   : > { %v3793_v8 = vpop.f32.mrf.mxu0  ;;  %v1105_v9 = vpop.f32.mrf.mxu1 }
 0x2aa   : > { %v2943_v10 = vpop.f32.mrf.mxu1  ;;  %v3795_v11 = vpop.f32.mrf.mxu0 }
 0x2ab   : > { %v1210_v39 = vadd.f32 %v2943_v10, %v2929_v59 }
 0x2ac   : > { %v1204_v12 = vpop.f32.mrf.mxu1  ;;  %v3797_v16 = vpop.f32.mrf.mxu0 }
 0x2ad   : > { %v1205_v41 = vadd.f32 %v1204_v12, %v1075_v19  ;;  %v1383_v45 = vadd.f32 %v2957_v55, %v1210_v39 }
 0x2ae   : > { %v2946_v15 = vpop.f32.mrf.mxu1  ;;  %v3013_v17 = vpop.f32.mrf.mxu0 }
 0x2af   : > { %v1220_v44 = vadd.f32 %v2946_v15, %v2932_v58  ;;  %v1382_v48 = vadd.f32 %v1343_v56, %v1205_v41 }
 0x2b0   : > { %v1214_v18 = vpop.f32.mrf.mxu1  ;;  %v3799_v21 = vpop.f32.mrf.mxu0 }
 0x2b1   : > { %v1215_v46 = vadd.f32 %v1214_v18, %v1085_v63  ;;  %v1385_v52 = vadd.f32 %v2960_v57, %v1220_v44 }
 0x2b2   : > { %v2949_v24 = vpop.f32.mrf.mxu1  ;;  %v3801_v25 = vpop.f32.mrf.mxu0 }
 0x2b3   : > { %v1230_v13 = vadd.f32 %v2949_v24, %v2935_v2  ;;  %v1384_v59 = vadd.f32 %v1353_v60, %v1215_v46 }
 0x2b4   : > { %v1224_v20 = vpop.f32.mrf.mxu1  ;;  %v3803_v30 = vpop.f32.mrf.mxu0 }
 0x2b5   : > { %v1225_v53 = vadd.f32 %v1224_v20, %v1095_v5  ;;  %v1387_v12 = vadd.f32 %v3783_v54, %v1230_v13 }
 0x2b6   : > { %v2952_v14 = vpop.f32.mrf.mxu1  ;;  %v3805_v32 = vpop.f32.mrf.mxu0 }
 0x2b7   : > { %v1386_v56 = vadd.f32 %v3785_v61, %v1225_v53  ;;  %v1240_v18 = vadd.f32 %v2952_v14, %v2938_v7 }
 0x2b8   : > { %v1234_v22 = vpop.f32.mrf.mxu1  ;;  %v3807_v36 = vpop.f32.mrf.mxu0 }
 0x2b9   : > { %3925 = vst [vmem:[#allocation7_spill] sm:$0xff] %v3807_v36  ;;  %v1235_v5 = vadd.f32 %v1234_v22, %v1105_v9 }
 0x2ba   : > { %v2966_v23 = vpop.f32.mrf.mxu1  ;;  %v3809_v35 = vpop.f32.mrf.mxu0 }
 0x2bb   : > { %3926 = vst [vmem:[#allocation8_spill] sm:$0xff] %v3809_v35 }
 0x2bc   : > { %v1373_v26 = vpop.f32.mrf.mxu1  ;;  %v3811_v42 = vpop.f32.mrf.mxu0 }
 0x2bd   : > { %3927 = vst [vmem:[#allocation9_spill] sm:$0xff] %v3811_v42 }
 0x2be   : > { %v2971_v28 = vpop.f32.mrf.mxu1  ;;  %v3041_v49 = vpop.f32.mrf.mxu0 }
 0x2bf   : > { %v1530_v47 = vadd.f32 %v2971_v28, %v1383_v45 }
 0x2c0   : > { %v1490_v29 = vpop.f32.mrf.mxu1  ;;  %v2226_v19 = vpop.f32.mrf.mxu0 }
 0x2c1   : > { %v1529_v51 = vadd.f32 %v1490_v29, %v1382_v48  ;;  %v1677_v10 = vadd.f32 %v2985_v62, %v1530_v47  ;;  %v1389_v62 = vadd.f32 %v2966_v23, %v1240_v18 }
 0x2c2   : > { %v2974_v27 = vpop.f32.mrf.mxu1  ;;  %v3044_v20 = vpop.f32.mrf.mxu0 }
 0x2c3   : > { %v1532_v36 = vadd.f32 %v2974_v27, %v1385_v52  ;;  %v1676_v15 = vadd.f32 %v1637_v1, %v1529_v51 }
 0x2c4   : > { %v1500_v33 = vpop.f32.mrf.mxu1  ;;  %v2236_v14 = vpop.f32.mrf.mxu0 }
 0x2c5   : > { %v1531_v58 = vadd.f32 %v1500_v33, %v1384_v59  ;;  %v1679_v57 = vadd.f32 %v3787_v3, %v1532_v36  ;;  %v1388_v33 = vadd.f32 %v1373_v26, %v1235_v5 }
 0x2c6   : > { %v2977_v34 = vpop.f32.mrf.mxu1 }
 0x2c7   : > { %v1534_v63 = vadd.f32 %v2977_v34, %v1387_v12  ;;  %v1678_v54 = vadd.f32 %v3789_v4, %v1531_v58  ;;  %v2762_v4 = vld [vmem:[%s3914_s4] ss:$0 sm:$0xff] }
 0x2c8   : > { %v1510_v37 = vpop.f32.mrf.mxu1 }
 0x2c9   : > { %v1533_v28 = vadd.f32 %v1510_v37, %v1386_v56  ;;  %v1681_v1 = vadd.f32 %v3791_v6, %v1534_v63 }
 0x2ca   : > { %v2980_v31 = vpop.f32.mrf.mxu1 }
 0x2cb   : > { %v1536_v39 = vadd.f32 %v2980_v31, %v1389_v62  ;;  %v1680_v22 = vadd.f32 %v3793_v8, %v1533_v28 }
 0x2cc   : > { %v1520_v38 = vpop.f32.mrf.mxu1 }
 0x2cd   : > { %v1535_v3 = vadd.f32 %v1520_v38, %v1388_v33  ;;  %v1683_v31 = vadd.f32 %v3795_v11, %v1536_v39 }
 0x2ce   : > { %v2999_v40 = vpop.f32.mrf.mxu1 }
 0x2cf   : > { %v1824_v55 = vadd.f32 %v2999_v40, %v1677_v10  ;;  %v1682_v8 = vadd.f32 %v3797_v16, %v1535_v3 }
 0x2d0   : > { %v1784_v43 = vpop.f32.mrf.mxu1 }
 0x2d1   : > { %v1823_v24 = vadd.f32 %v1784_v43, %v1676_v15  ;;  %v1972_v27 = vadd.f32 %v3013_v17, %v1824_v55 }
 0x2d2   : > { %v3002_v0 = vpop.f32.mrf.mxu1 }
 0x2d3   : > { %v1826_v29 = vadd.f32 %v3002_v0, %v1679_v57  ;;  %v1971_v7 = vadd.f32 %v3799_v21, %v1823_v24 }
 0x2d4   : > { %v1794_v50 = vpop.f32.mrf.mxu1 }
 0x2d5   : > { %v1825_v61 = vadd.f32 %v1794_v50, %v1678_v54  ;;  %v1974_v6 = vadd.f32 %v3801_v25, %v1826_v29 }
 0x2d6   : > { %v3005_v35 = vpop.f32.mrf.mxu1 }
 0x2d7   : > { %v1828_v9 = vadd.f32 %v3005_v35, %v1681_v1  ;;  %v1973_v38 = vadd.f32 %v3803_v30, %v1825_v61  ;;  %v3047_v35 = vpop.f32.mrf.mxu0  ;;  %v2441_v61 = vld [vmem:[%s3917_s7] sm:$0xff] }
 0x2d8   : > { %v1804_v42 = vpop.f32.mrf.mxu1  ;;  %3071 = vmatprep.subr.mxu0 %v2441_v61 }
 0x2d9   : > { %v1827_v26 = vadd.f32 %v1804_v42, %v1680_v22  ;;  %v1976_v45 = vadd.f32 %v3805_v32, %v1828_v9  ;;  %v3928_v42 = vld [vmem:[#allocation7_spill] sm:$0xff]  ;;  %v2246_v52 = vpop.f32.mrf.mxu0  ;;  %v3929_v32 = vld [vmem:[#allocation8_spill] sm:$0xff]  ;;  %3072 = vmatpush3.msra.mxu0 %v2441_v61 }
 0x2da   : > { %v3008_v2 = vpop.f32.mrf.mxu1 }
 0x2db   : > { %v1830_v0 = vadd.f32 %v3008_v2, %v1683_v31  ;;  %v1975_v13 = vadd.f32 %v3928_v42, %v1827_v26  ;;  %v3050_v55 = vpop.f32.mrf.mxu0  ;;  %v3930_v2 = vld [vmem:[#allocation9_spill] sm:$0xff] }
 0x2dc   : > { %v1814_v60 = vpop.f32.mrf.mxu1 }
 0x2dd   : > { %v1978_v12 = vadd.f32 %v3929_v32, %v1830_v0  ;;  %v2256_v62 = vpop.f32.mrf.mxu0 }
 0x2de   : > { %v3027_v34 = vpop.f32.mrf.mxu1 }
 0x2df   : > { %v2119_v40 = vadd.f32 %v3027_v34, %v1972_v27 }
 0x2e0   : > { %v2079_v36 = vpop.f32.mrf.mxu1 }
 0x2e1   : > { %v2266_v23 = vadd.f32 %v3041_v49, %v2119_v40  ;;  %v2118_v17 = vadd.f32 %v2079_v36, %v1971_v7  ;;  %v1829_v49 = vadd.f32 %v1814_v60, %v1682_v8  ;;  %v2763_v40 = vld [vmem:[%s3916_s6] ss:$0 sm:$0xff] }
 0x2e2   : > { %v3030_v37 = vpop.f32.mrf.mxu1 }
 0x2e3   : > { %v2265_v41 = vadd.f32 %v2226_v19, %v2118_v17  ;;  %v2121_v21 = vadd.f32 %v3030_v37, %v1974_v6  ;;  %v2281_v43 = vadd.f32 %v2762_v4, %v2266_v23  ;;  %v1977_v18 = vadd.f32 %v3930_v2, %v1829_v49 }
 0x2e4   : > { %v2089_v44 = vpop.f32.mrf.mxu1 }
 0x2e5   : > { %v2280_v46 = vadd.f32 %v2762_v4, %v2265_v41  ;;  %v2268_v47 = vadd.f32 %v3044_v20, %v2121_v21  ;;  %v2120_v48 = vadd.f32 %v2089_v44, %v1973_v38  ;;  %v2289_v30 = vmax.f32 %v2281_v43, 0.0 }
 0x2e6   : > { %v3033_v25 = vpop.f32.mrf.mxu1 }
 0x2e7   : > { %v2288_v11 = vmax.f32 %v2280_v46, 0.0  ;;  %v2267_v50 = vadd.f32 %v2236_v14, %v2120_v48  ;;  %v2123_v51 = vadd.f32 %v3033_v25, %v1976_v45  ;;  %v2283_v53 = vadd.f32 %v2762_v4, %v2268_v47  ;;  %v2772_v48 = vld [vmem:[%s3918_s8] ss:$0 sm:$0xff] }
 0x2e8   : > { %v2099_v59 = vpop.f32.mrf.mxu1 }
 0x2e9   : > { %v2282_v16 = vadd.f32 %v2762_v4, %v2267_v50  ;;  %v2270_v10 = vadd.f32 %v3047_v35, %v2123_v51  ;;  %v2122_v19 = vadd.f32 %v2099_v59, %v1975_v13  ;;  %3053 = vmatprep.mubr.msk.f32.mxu1 %vm713_vm3, %v2288_v11  ;;  %v2291_v24 = vmax.f32 %v2283_v53, 0.0 }
 0x2ea   : > { %v3036_v58 = vpop.f32.mrf.mxu1  ;;  %3054 = vmatmul.mubr.msk.f32.vlgmr.msra.gmra.mxu1 %vm713_vm3, %v2289_v30 }
 0x2eb   : > { %v2290_v15 = vmax.f32 %v2282_v16, 0.0  ;;  %v2269_v63 = vadd.f32 %v2246_v52, %v2122_v19  ;;  %v2125_v56 = vadd.f32 %v3036_v58, %v1978_v12  ;;  %v2285_v57 = vadd.f32 %v2762_v4, %v2270_v10 }
 0x2ec   : > { %v2109_v5 = vpop.f32.mrf.mxu1 }
 0x2ed   : > { %v2284_v20 = vadd.f32 %v2762_v4, %v2269_v63  ;;  %v2272_v28 = vadd.f32 %v3050_v55, %v2125_v56  ;;  %v2124_v60 = vadd.f32 %v2109_v5, %v1977_v18  ;;  %3056 = vmatprep.mubr.msk.f32.mxu1 %vm713_vm3, %v2290_v15  ;;  %v2293_v27 = vmax.f32 %v2285_v57, 0.0 }
 0x2ee   : > { %3057 = vmatmul.mubr.msk.f32.gmra.mxu1 %vm713_vm3, %v2291_v24 }
 0x2ef   : > { %v2292_v29 = vmax.f32 %v2284_v20, 0.0  ;;  %v2271_v54 = vadd.f32 %v2256_v62, %v2124_v60  ;;  %v2287_v33 = vadd.f32 %v2762_v4, %v2272_v28 }
 0x2f1   : > { %v2286_v1 = vadd.f32 %v2762_v4, %v2271_v54  ;;  %3059 = vmatprep.mubr.msk.f32.mxu1 %vm713_vm3, %v2292_v29  ;;  %v2295_v39 = vmax.f32 %v2287_v33, 0.0 }
 0x2f2   : > { %3060 = vmatmul.mubr.msk.f32.gmra.mxu1 %vm713_vm3, %v2293_v27 }
 0x2f3   : > { %v2294_v34 = vmax.f32 %v2286_v1, 0.0 }
 0x2f5   : > { %3062 = vmatprep.mubr.msk.f32.mxu1 %vm713_vm3, %v2294_v34 }
 0x2f6   : > { %3063 = vmatmul.mubr.msk.f32.gmra.mxu1 %vm713_vm3, %v2295_v39 }
 0x3aa   : > { %v3055_v7 = vpop.f32.mrf.mxu1 }
 0x3ab   : > { %v2400_v14 = vadd.f32 %v3055_v7, %v2763_v40 }
 0x3ac   : > { %v2394_v3 = vpop.f32.mrf.mxu1 }
 0x3ad   : > { %v2395_v9 = vadd.f32 %v2763_v40, %v2394_v3  ;;  %v2434_v23 = vmax.f32 %v2400_v14, 0.0 }
 0x3ae   : > { %v3058_v22 = vpop.f32.mrf.mxu1 }
 0x3af   : > { %v2433_v36 = vmax.f32 %v2395_v9, 0.0  ;;  %v2410_v4 = vadd.f32 %v3058_v22, %v2763_v40 }
 0x3b0   : > { %v2404_v17 = vpop.f32.mrf.mxu1 }
 0x3b1   : > { %v2405_v6 = vadd.f32 %v2763_v40, %v2404_v17  ;;  %3073 = vmatprep.mubr.msk.f32.mxu0 %vm767_vm10, %v2433_v36  ;;  %v2436_v31 = vmax.f32 %v2410_v4, 0.0 }
 0x3b2   : > { %v3061_v26 = vpop.f32.mrf.mxu1  ;;  %3074 = vmatmul.mubr.msk.f32.vlgmr.msra.gmra.mxu0 %vm767_vm10, %v2434_v23 }
 0x3b3   : > { %v2435_v37 = vmax.f32 %v2405_v6, 0.0  ;;  %v2420_v41 = vadd.f32 %v3061_v26, %v2763_v40 }
 0x3b4   : > { %v2414_v21 = vpop.f32.mrf.mxu1 }
 0x3b5   : > { %v2415_v38 = vadd.f32 %v2763_v40, %v2414_v21  ;;  %3076 = vmatprep.mubr.msk.f32.mxu0 %vm767_vm10, %v2435_v37  ;;  %v2438_v43 = vmax.f32 %v2420_v41, 0.0 }
 0x3b6   : > { %v3064_v35 = vpop.f32.mrf.mxu1  ;;  %3077 = vmatmul.mubr.msk.f32.gmra.mxu0 %vm767_vm10, %v2436_v31 }
 0x3b7   : > { %v2437_v8 = vmax.f32 %v2415_v38, 0.0  ;;  %v2430_v44 = vadd.f32 %v3064_v35, %v2763_v40 }
 0x3b8   : > { %v2424_v45 = vpop.f32.mrf.mxu1 }
 0x3b9   : > { %v2425_v0 = vadd.f32 %v2763_v40, %v2424_v45  ;;  %3079 = vmatprep.mubr.msk.f32.mxu0 %vm767_vm10, %v2437_v8  ;;  %v2440_v47 = vmax.f32 %v2430_v44, 0.0 }
 0x3ba   : > { %3080 = vmatmul.mubr.msk.f32.gmra.mxu0 %vm767_vm10, %v2438_v43 }
 0x3bb   : > { %v2439_v46 = vmax.f32 %v2425_v0, 0.0 }
 0x3bd   : > { %3082 = vmatprep.mubr.msk.f32.mxu0 %vm767_vm10, %v2439_v46 }
 0x3be   : > { %3083 = vmatmul.mubr.msk.f32.gmra.mxu0 %vm767_vm10, %v2440_v47 }
 0x472   : > { %v3075_v25 = vpop.f32.mrf.mxu0 }
 0x473   : > { %v2548_v42 = vadd.f32 %v3075_v25, %v2772_v48 }
 0x474   : > { %v2542_v13 = vpop.f32.mrf.mxu0 }
 0x475   : > { %2582 = vst [vmem:[%s325_s16 + $0x8] sm:$0xff] %v2548_v42  ;;  %v2543_v49 = vadd.f32 %v2772_v48, %v2542_v13 }
 0x476   : > { %v3078_v11 = vpop.f32.mrf.mxu0 }
 0x477   : > { %2581 = vst [vmem:[%s325_s16] sm:$0xff] %v2543_v49  ;;  %v2558_v50 = vadd.f32 %v3078_v11, %v2772_v48 }
 0x478   : > { %v2552_v51 = vpop.f32.mrf.mxu0 }
 0x479   : > { %2584 = vst [vmem:[%s325_s16 + $0x18] sm:$0xff] %v2558_v50  ;;  %v2553_v52 = vadd.f32 %v2772_v48, %v2552_v51 }
 0x47a   : > { %v3081_v30 = vpop.f32.mrf.mxu0 }
 0x47b   : > { %2583 = vst [vmem:[%s325_s16 + $0x10] sm:$0xff] %v2553_v52  ;;  %v2568_v53 = vadd.f32 %v3081_v30, %v2772_v48 }
 0x47c   : > { %v2562_v59 = vpop.f32.mrf.mxu0 }
 0x47d   : > { %2586 = vst [vmem:[%s325_s16 + $0x28] sm:$0xff] %v2568_v53  ;;  %v2563_v16 = vadd.f32 %v2772_v48, %v2562_v59 }
 0x47e   : > { %v3084_v10 = vpop.f32.mrf.mxu0 }
 0x47f   : > { %2585 = vst [vmem:[%s325_s16 + $0x20] sm:$0xff] %v2563_v16  ;;  %v2578_v19 = vadd.f32 %v3084_v10, %v2772_v48 }
 0x480   : > { %v2572_v32 = vpop.f32.mrf.mxu0 }
 0x481   : > { %2588 = vst [vmem:[%s325_s16 + $0x38] sm:$0xff] %v2578_v19  ;;  %v2573_v12 = vadd.f32 %v2772_v48, %v2572_v32 }
 0x483   : > { %2587 = vst [vmem:[%s325_s16 + $0x30] sm:$0xff] %v2573_v12 }
 0x484   : > { %3149 = shalt.err (!%p3146_p3)
}
 0x485   : > { %s3150_s28 = scalar_lea.hbm %s3863_s25, 1024  ;;  %s3154_s23 = scalar_lea.hbm %s3919_s9, 2048 }
 0x486   : > { %p3151_p4 = scmp.ne.s32.totalorder %s3863_s25, %s3150_s28  ;;  %p3155_p9 = scmp.lt.s32.totalorder %s3863_s25, %s3919_s9 }
 0x487   : > { %p3156_p10 = scmp.lt.s32.totalorder %s3154_s23, %s3150_s28 }
 0x488   : > { %p3152_p7 = pnand %p3151_p4, %p3297_p5 }
 0x489   : > { %p3157_p11 = por %p3156_p10, %p3155_p9 }
 0x48a   : > { %p3153_p8 = pneg %p3152_p7 }
 0x48c   : > { %p3158_p12 = pnand %p3157_p11, %p3153_p8 }
 0x48e   : > { %3161 = shalt.err (!%p3158_p12)
}
 0x48f   : > { %s3208_s26 = smov 128  }
 0x490   : > { %3087 = dma.vmem_to_hbm [thread:$0]  (%p3297_p5), %s3865_s22, 1024, %s3863_s25, %s3869_s13, %s3208_s26, %s3208_s26, %s3200_s27  }
 0x491 PF: > { %p3093_p13 = scmp.ge.s32.totalorder %s3196_s12, 2  ;;  %s2618_s14 = sand.u32 1, %s3184_s30  }
 0x492   : > { %s2619_s21 = scalar_lea.sflag [#allocation5], %s2618_s14 }
 0x493   : > { %p3090_p0 = pnand %p3093_p13, %p3301_p6 }
 0x495   : > { %p3091_p1 = pneg %p3090_p0 }
 0x497   : > { %3179 = dma.done.wait (%p3091_p1), %s2619_s21, 1024  }
 0x498   : > { %3181 = vsyncadd (%p3091_p1), %s2619_s21, 4294966272  ;;  %p19_p2 = scmp.ge.s32.totalorder %s3284_s15, 4   ;;  %s3931_s30 = smov %s3188_s10 }
 0x499   : > { %s3932_s10 = smov %s3192_s11  ;;  %s3933_s11 = smov %s3295_s18 }
 0x49a   : > { %s3934_s12 = smov %s3284_s15  ;;  %21 = sbr.rel (!%p19_p2) target bundleno = 3 (0x3), region = 105 }
 0x49f   :  { %2624 = vsyncpa [#allocation5], 1 }
 0x4a0   :  { %2626 = vsyncpa [#allocation5 + $0x1], 1 }

</bundles_post_ra>
